<compile_context>
chip_gen: v6e
topology: v6e:2x2x1
jax: 0.10.0
libtpu: 0.0.40
codegen_flags: <defaults>
</compile_context>

<pallas_src>
import functools

import jax
import jax.numpy as jnp
from jax import lax
from jax.experimental import pallas as pl
from jax.experimental.pallas import tpu as pltpu

BN_EPS = 1e-5
_PHASES = ((0, 0), (0, 1), (1, 0), (1, 1))   # sub-pixel phase p = 2r + s
_TAPS = ((0, 0), (0, 1), (1, 0), (1, 1))     # tap (j, i); K-concat order


def _round_up(x, m):
    return (x + m - 1) // m * m


# ---------------------------------------------------------------------------
# Fused kernel: CBN affine + ReLU + ConvTranspose2d(4x4, stride 2, pad 1)
# + per-channel partial sum / sum-of-squares of the conv output (next layer BN).
#
# Scratch layout per sample ("padded flat", row stride RS = round_up(W+2, 8)):
#   row 0            : spare zeros
#   row 1            : top halo zeros
#   rows 2 .. H+1    : spatial rows, data in cols [0, W), zeros in cols [W, RS)
#   row H+2          : bottom halo zeros
# Left halo of a row is the previous row's zero tail, so every tap of the
# transposed conv is a contiguous row-offset slice:
#   out[n, 2a+r, 2b+s, :] = bias + sum_{j,i in {0,1}}
#       x_cbnrelu[n, a+r-j, b+s-i, :] @ W[:, :, 1-r+2j, 1-s+2i]
# with scratch offset (2+r-j)*RS + (s-i) relative to output row m = a*RS + b.
# Junk columns (b >= W) / junk tail rows are finite, masked out of the stats and
# dropped by the wrapper de-interleave.
# ---------------------------------------------------------------------------
def _gen_block_kernel(x_ref, st_ref, w_ref, b_ref,
                      y_ref, sum_ref, ssq_ref,
                      xs_ref, *, NB, H, W, RS, Cout, MC):
    Msamp = (H + 3) * RS
    M = NB * Msamp

    # ---- prologue: zero halos, fused CBN affine + ReLU into the padded scratch
    xs_ref[...] = jnp.zeros_like(xs_ref)
    for n in range(NB):
        scale = st_ref[n, 0:1, :]                                  # (1, Cin) f32
        shift = st_ref[n, 1:2, :]
        xa = x_ref[n].astype(jnp.float32) * scale + shift          # (H*W, Cin)
        xa = jnp.maximum(xa, 0.0)
        base = n * Msamp + 2 * RS                                  # 8-aligned
        for h in range(H):
            xs_ref[base + h * RS: base + h * RS + W, :] = xa[h * W:(h + 1) * W, :]

    bias = b_ref[...]                                              # (1, 4*Cout) f32
    part_sum = jnp.zeros((1, 4 * Cout), jnp.float32)
    part_ssq = jnp.zeros((1, 4 * Cout), jnp.float32)

    # ---- transposed conv: per row chunk, 4 phase GEMMs with K = 4*Cin
    row0 = 0
    while row0 < M:
        mc = min(MC, M - row0)
        phase_out = []
        for p, (r, s) in enumerate(_PHASES):
            parts = []
            for (j, i) in _TAPS:
                off = (2 + r - j) * RS + (s - i) + row0
                parts.append(xs_ref[off: off + mc, :])
            a_op = jnp.concatenate(parts, axis=1).astype(jnp.bfloat16)  # (mc, 4*Cin)
            phase_out.append(jnp.dot(a_op, w_ref[p],
                                     preferred_element_type=jnp.float32))
        out = jnp.concatenate(phase_out, axis=1) + bias            # (mc, 4*Cout) f32

        # validity mask (drop pad columns and per-sample junk tail rows)
        q = (row0 + lax.broadcasted_iota(jnp.int32, (mc, 1), 0)) % Msamp
        mask = ((q < H * RS) & ((q % RS) < W)).astype(jnp.float32)
        valid = out * mask
        part_sum = part_sum + jnp.sum(valid, axis=0, keepdims=True)
        part_ssq = part_ssq + jnp.sum(valid * valid, axis=0, keepdims=True)

        y_ref[row0: row0 + mc, :] = out.astype(y_ref.dtype)        # lane-dense bf16
        row0 += mc

    # per-grid-block partial stats (reduced in the wrapper) -> grid stays parallel
    sum_ref[0] = part_sum
    ssq_ref[0] = part_ssq


def _pick_batch_block(N, Msamp, RS, HW, Cin, Cout):
    """Largest divisor of N whose per-step working set fits a conservative budget."""
    budget = 10 * 1024 * 1024
    best = 1
    for nb in range(1, N + 1):
        if N % nb:
            continue
        M = nb * Msamp
        need = (4 * (M + 4 * RS) * Cin          # f32 padded scratch
                + 2 * 2 * nb * HW * Cin         # bf16 input block (double buffered)
                + 2 * 2 * M * 4 * Cout          # bf16 output block (double buffered)
                + 2 * 2 * 16 * Cin * Cout       # bf16 weights
                + 16 * min(M, 512) * Cin)       # A-operand / accumulator temporaries
        if need <= budget and M <= 8192:
            best = nb
    return best


def cbn_relu_convt(x_flat, H, W, scale, shift, w, b):
    """Fused CBN -> ReLU -> ConvTranspose2d(4x4, stride 2, padding 1).

    x_flat : (N, H*W, Cin) NHWC-flattened activation (bf16 or f32), pre-CBN
    scale  : (N, Cin) f32 per-sample CBN scale  = gamma[y] * rsqrt(var + eps)
    shift  : (N, Cin) f32 per-sample CBN shift  = beta[y]  - mean * scale
    w      : (Cin, Cout, 4, 4) PyTorch ConvTranspose2d weight, b: (Cout,)
    Returns (y, ch_sum, ch_ssq): y (N, 2H, 2W, Cout) bf16 and f32 per-channel
    sum / sum-of-squares of y (for the next layer's conditional batch norm).
    """
    N, HW, Cin = x_flat.shape
    assert HW == H * W
    Cout = w.shape[1]

    RS = _round_up(W + 2, 8)                 # 8-aligned padded row stride
    Msamp = (H + 3) * RS
    NB = _pick_batch_block(N, Msamp, RS, HW, Cin, Cout)
    G = N // NB
    M = NB * Msamp
    MC = M if M <= 1024 else 512             # GEMM row-chunk size

    # per-phase weights, 4 taps stacked along the contraction dim -> (4, 4*Cin, Cout)
    blocks = []
    for (r, s) in _PHASES:
        taps = [w[:, :, 1 - r + 2 * j, 1 - s + 2 * i] for (j, i) in _TAPS]
        blocks.append(jnp.concatenate(taps, axis=0))
    wr = jnp.stack(blocks, axis=0).astype(jnp.bfloat16)

    st = jnp.stack([scale, shift], axis=1).astype(jnp.float32)     # (N, 2, Cin)
    b4 = jnp.tile(jnp.asarray(b, jnp.float32), 4).reshape(1, 4 * Cout)

    kernel = functools.partial(_gen_block_kernel, NB=NB, H=H, W=W, RS=RS,
                               Cout=Cout, MC=MC)

    flops = int(2 * 16 * N * Msamp * Cin * Cout)
    bytes_accessed = int(x_flat.size * x_flat.dtype.itemsize
                         + wr.size * 2 + N * Msamp * 4 * Cout * 2
                         + st.size * 4 + 2 * G * 4 * Cout * 4)

    yp, s1, s2 = pl.pallas_call(
        kernel,
        out_shape=(
            jax.ShapeDtypeStruct((N * Msamp, 4 * Cout), jnp.bfloat16),
            jax.ShapeDtypeStruct((G, 1, 4 * Cout), jnp.float32),
            jax.ShapeDtypeStruct((G, 1, 4 * Cout), jnp.float32),
        ),
        grid_spec=pltpu.PrefetchScalarGridSpec(
            num_scalar_prefetch=0,
            grid=(G,),
            in_specs=[
                pl.BlockSpec((NB, HW, Cin), lambda g: (g, 0, 0)),       # activations
                pl.BlockSpec((NB, 2, Cin), lambda g: (g, 0, 0)),        # CBN scale/shift
                pl.BlockSpec((4, 4 * Cin, Cout), lambda g: (0, 0, 0)),  # weights
                pl.BlockSpec((1, 4 * Cout), lambda g: (0, 0)),          # bias (x4 phases)
            ],
            out_specs=(
                pl.BlockSpec((M, 4 * Cout), lambda g: (g, 0)),          # phase-lane out
                pl.BlockSpec((1, 1, 4 * Cout), lambda g: (g, 0, 0)),    # partial sum
                pl.BlockSpec((1, 1, 4 * Cout), lambda g: (g, 0, 0)),    # partial sumsq
            ),
            scratch_shapes=[pltpu.VMEM((M + 4 * RS, Cin), jnp.float32)],
        ),
        compiler_params=pltpu.CompilerParams(
            dimension_semantics=("parallel",)),
        cost_estimate=pl.CostEstimate(flops=flops, transcendentals=0,
                                      bytes_accessed=bytes_accessed),
    )(x_flat, st, wr, b4)

    # de-interleave the 4 sub-pixel phases: one bf16 pass, no HBM padding needed.
    y = yp.reshape(N, Msamp, 4, Cout)[:, :H * RS]
    y = y.reshape(N, H, RS, 4, Cout)[:, :, :W]
    y = y.reshape(N, H, W, 2, 2, Cout)
    y = jnp.transpose(y, (0, 1, 3, 2, 4, 5)).reshape(N, 2 * H, 2 * W, Cout)

    ch_sum = jnp.sum(s1, axis=(0, 1)).reshape(4, Cout).sum(axis=0)
    ch_ssq = jnp.sum(s2, axis=(0, 1)).reshape(4, Cout).sum(axis=0)
    return y, ch_sum, ch_ssq


# ---------------------------------------------------------------------------
# Model glue
# ---------------------------------------------------------------------------
def _cbn_scale_shift(gamma_emb, beta_emb, y, ch_sum, ch_ssq, count):
    """Per-sample scale/shift for conditional batch norm (training-mode stats)."""
    mean = ch_sum / count
    var = jnp.maximum(ch_ssq / count - mean * mean, 0.0)   # cancellation guard
    inv = lax.rsqrt(var + BN_EPS)
    scale = gamma_emb[y] * inv[None, :]
    shift = beta_emb[y] - mean[None, :] * scale
    return scale, shift


def generator_forward(params, Z, y, with_tanh=False):
    """Forward pass of GeneratorConditionalCBN."""
    if Z.ndim == 4:
        Z = Z.reshape(Z.shape[0], Z.shape[1])
    N, z_dim = Z.shape

    # first conv: ConvTranspose2d(z_dim -> C0, 4x4, s1, p0) on a 1x1 input is one
    # tiny (N x z_dim) matmul -> plain JAX per the earlier perf review.
    w0, b0 = params["first_conv"]["w"], params["first_conv"]["b"]
    C0 = w0.shape[1]
    wmat = jnp.transpose(w0, (0, 2, 3, 1)).reshape(z_dim, 16 * C0)
    x = (Z.astype(jnp.float32) @ wmat).reshape(N, 4, 4, C0) + b0.reshape(1, 1, 1, C0)
    ch_sum = jnp.sum(x, axis=(0, 1, 2))
    ch_ssq = jnp.sum(x * x, axis=(0, 1, 2))
    count = N * 4 * 4
    H = Wd = 4
    x = x.reshape(N, H * Wd, C0).astype(jnp.bfloat16)      # bf16 inter-layer path

    # up-sampling blocks: CBN -> ReLU -> ConvT(4x4, s2, p1)   (fused Pallas kernel)
    for layer in params["layers"]:
        scale, shift = _cbn_scale_shift(layer["gamma"], layer["beta"], y,
                                        ch_sum, ch_ssq, count)
        x, ch_sum, ch_ssq = cbn_relu_convt(x, H, Wd, scale, shift,
                                           layer["w"], layer["b"])
        H, Wd = 2 * H, 2 * Wd
        count = N * H * Wd
        x = x.reshape(N, H * Wd, x.shape[-1])

    lc = params["last_conv"]
    scale, shift = _cbn_scale_shift(lc["gamma"], lc["beta"], y, ch_sum, ch_ssq, count)
    x, _, _ = cbn_relu_convt(x, H, Wd, scale, shift, lc["w"], lc["b"])

    x = x.astype(jnp.float32)
    if with_tanh:
        x = jnp.tanh(x)
    return jnp.transpose(x, (0, 3, 1, 2))                  # NCHW, like the module


def init_params(key, z_dim, n_classes, dim, dim_mults, out_dim):
    # Deterministic synthetic stand-in for init_weights('normal'):
    # conv weights ~ N(0, 0.02), biases 0, CBN gamma ~ 1 + N(0, 0.02), beta ~ N(0, 0.02).
    dims = [dim * m for m in dim_mults]
    keys = jax.random.split(key, 3 * len(dim_mults) + 4)
    k = iter(range(len(keys)))
    params = {
        "first_conv": {
            "w": 0.02 * jax.random.normal(keys[next(k)], (z_dim, dims[0], 4, 4), jnp.float32),
            "b": jnp.zeros((dims[0],), jnp.float32),
        },
        "layers": [],
    }
    for i in range(len(dim_mults) - 1):
        params["layers"].append({
            "gamma": 1.0 + 0.02 * jax.random.normal(keys[next(k)], (n_classes, dims[i]), jnp.float32),
            "beta": 0.02 * jax.random.normal(keys[next(k)], (n_classes, dims[i]), jnp.float32),
            "w": 0.02 * jax.random.normal(keys[next(k)], (dims[i], dims[i + 1], 4, 4), jnp.float32),
            "b": jnp.zeros((dims[i + 1],), jnp.float32),
        })
    params["last_conv"] = {
        "gamma": 1.0 + 0.02 * jax.random.normal(keys[next(k)], (n_classes, dims[-1]), jnp.float32),
        "beta": 0.02 * jax.random.normal(keys[next(k)], (n_classes, dims[-1]), jnp.float32),
        "w": 0.02 * jax.random.normal(keys[next(k)], (dims[-1], out_dim, 4, 4), jnp.float32),
        "b": jnp.zeros((out_dim,), jnp.float32),
    }
    return params


if __name__ == "__main__":
    key = jax.random.PRNGKey(0)
    kp, kz, ky = jax.random.split(key, 3)

    # small config consistent with the module
    z_dim, n_classes, dim, dim_mults, out_dim = 16, 4, 32, (2, 1), 3
    batch = 2

    params = init_params(kp, z_dim, n_classes, dim, dim_mults, out_dim)
    Z = jax.random.normal(kz, (batch, z_dim), jnp.float32)
    y = jax.random.randint(ky, (batch,), 0, n_classes)

    out = generator_forward(params, Z, y)
    out = jax.block_until_ready(out)
    side = 4 * (2 ** len(dim_mults))   # 4 -> 8 (up block) -> 16 (last conv)
    assert out.shape == (batch, out_dim, side, side), out.shape
    assert bool(jnp.all(jnp.isfinite(out)))
    print("KERNEL_OK")
</pallas_src>

<mosaic_0001>
module attributes {stable_mosaic.version = 11 : i64} {
  func.func @_gen_block_kernel(%arg0: i32, %arg1: memref<2x16x64xbf16, #tpu.memory_space<vmem>>, %arg2: memref<2x2x64xf32, #tpu.memory_space<vmem>>, %arg3: memref<4x256x32xbf16, #tpu.memory_space<vmem>>, %arg4: memref<1x128xf32, #tpu.memory_space<vmem>>, %arg5: memref<112x128xbf16, #tpu.memory_space<vmem>>, %arg6: memref<1x1x128xf32, #tpu.memory_space<vmem>>, %arg7: memref<1x1x128xf32, #tpu.memory_space<vmem>>, %arg8: memref<144x64xf32, #tpu.memory_space<vmem>>) attributes {dimension_semantics = [#tpu.dimension_semantics<parallel>], iteration_bounds = array<i64: 1>, scalar_prefetch = 0 : i64, scratch_operands = 1 : i64, tpu.core_type = #tpu.core_type<tc>, window_params = [{transform_indices = @transform_0, window_bounds = array<i64: 2, 16, 64>}, {transform_indices = @transform_1, window_bounds = array<i64: 2, 2, 64>}, {pipeline_mode = #tpu.pipeline_mode<synchronous>, transform_indices = @transform_2, window_bounds = array<i64: 4, 256, 32>}, {pipeline_mode = #tpu.pipeline_mode<synchronous>, transform_indices = @transform_3, window_bounds = array<i64: 1, 128>}, {transform_indices = @transform_4, window_bounds = array<i64: 112, 128>}, {transform_indices = @transform_5, window_bounds = array<i64: 1, 1, 128>}, {transform_indices = @transform_6, window_bounds = array<i64: 1, 1, 128>}]} {
    %cst = arith.constant 0.000000e+00 : f32
    %0 = vector.broadcast %cst : f32 to vector<144x64xf32>
    %c0 = arith.constant 0 : index
    %c0_0 = arith.constant 0 : index
    %1 = vector.load %arg8[%c0, %c0_0] : memref<144x64xf32, #tpu.memory_space<vmem>>, vector<144x64xf32>
    tpu.vector_store %arg8[%c0, %c0_0], %0 {strides = array<i32>} : memref<144x64xf32, #tpu.memory_space<vmem>>, vector<144x64xf32>,
    %c0_1 = arith.constant 0 : index
    %c0_2 = arith.constant 0 : index
    %c0_3 = arith.constant 0 : index
    %2 = vector.load %arg2[%c0_1, %c0_2, %c0_3] : memref<2x2x64xf32, #tpu.memory_space<vmem>>, vector<1x1x64xf32>
    %3 = vector.shape_cast %2 : vector<1x1x64xf32> to vector<1x64xf32>
    %c0_4 = arith.constant 0 : index
    %c1 = arith.constant 1 : index
    %c0_5 = arith.constant 0 : index
    %4 = vector.load %arg2[%c0_4, %c1, %c0_5] : memref<2x2x64xf32, #tpu.memory_space<vmem>>, vector<1x1x64xf32>
    %5 = vector.shape_cast %4 : vector<1x1x64xf32> to vector<1x64xf32>
    %c0_6 = arith.constant 0 : index
    %c0_7 = arith.constant 0 : index
    %c0_8 = arith.constant 0 : index
    %6 = vector.load %arg1[%c0_6, %c0_7, %c0_8] : memref<2x16x64xbf16, #tpu.memory_space<vmem>>, vector<1x16x64xbf16>
    %7 = vector.shape_cast %6 : vector<1x16x64xbf16> to vector<16x64xbf16>
    %8 = arith.extf %7 : vector<16x64xbf16> to vector<16x64xf32>
    %9 = vector.broadcast %3 : vector<1x64xf32> to vector<16x64xf32>
    %10 = arith.mulf %8, %9 : vector<16x64xf32>
    %11 = vector.broadcast %5 : vector<1x64xf32> to vector<16x64xf32>
    %12 = arith.addf %10, %11 : vector<16x64xf32>
    %cst_9 = arith.constant 0.000000e+00 : f32
    %13 = vector.broadcast %cst_9 : f32 to vector<16x64xf32>
    %14 = arith.maximumf %12, %13 : vector<16x64xf32>
    %15 = vector.extract_strided_slice %14 {offsets = [0, 0], sizes = [4, 64], strides = [1, 1]} : vector<16x64xf32> to vector<4x64xf32>
    %c16 = arith.constant 16 : index
    %c0_10 = arith.constant 0 : index
    %16 = vector.load %arg8[%c16, %c0_10] : memref<144x64xf32, #tpu.memory_space<vmem>>, vector<4x64xf32>
    tpu.vector_store %arg8[%c16, %c0_10], %15 {strides = array<i32>} : memref<144x64xf32, #tpu.memory_space<vmem>>, vector<4x64xf32>,
    %17 = vector.extract_strided_slice %14 {offsets = [4, 0], sizes = [4, 64], strides = [1, 1]} : vector<16x64xf32> to vector<4x64xf32>
    %c24 = arith.constant 24 : index
    %c0_11 = arith.constant 0 : index
    %18 = vector.load %arg8[%c24, %c0_11] : memref<144x64xf32, #tpu.memory_space<vmem>>, vector<4x64xf32>
    tpu.vector_store %arg8[%c24, %c0_11], %17 {strides = array<i32>} : memref<144x64xf32, #tpu.memory_space<vmem>>, vector<4x64xf32>,
    %19 = vector.extract_strided_slice %14 {offsets = [8, 0], sizes = [4, 64], strides = [1, 1]} : vector<16x64xf32> to vector<4x64xf32>
    %c32 = arith.constant 32 : index
    %c0_12 = arith.constant 0 : index
    %20 = vector.load %arg8[%c32, %c0_12] : memref<144x64xf32, #tpu.memory_space<vmem>>, vector<4x64xf32>
    tpu.vector_store %arg8[%c32, %c0_12], %19 {strides = array<i32>} : memref<144x64xf32, #tpu.memory_space<vmem>>, vector<4x64xf32>,
    %21 = vector.extract_strided_slice %14 {offsets = [12, 0], sizes = [4, 64], strides = [1, 1]} : vector<16x64xf32> to vector<4x64xf32>
    %c40 = arith.constant 40 : index
    %c0_13 = arith.constant 0 : index
    %22 = vector.load %arg8[%c40, %c0_13] : memref<144x64xf32, #tpu.memory_space<vmem>>, vector<4x64xf32>
    tpu.vector_store %arg8[%c40, %c0_13], %21 {strides = array<i32>} : memref<144x64xf32, #tpu.memory_space<vmem>>, vector<4x64xf32>,
    %c1_14 = arith.constant 1 : index
    %c0_15 = arith.constant 0 : index
    %c0_16 = arith.constant 0 : index
    %23 = vector.load %arg2[%c1_14, %c0_15, %c0_16] : memref<2x2x64xf32, #tpu.memory_space<vmem>>, vector<1x1x64xf32>
    %24 = vector.shape_cast %23 : vector<1x1x64xf32> to vector<1x64xf32>
    %c1_17 = arith.constant 1 : index
    %c1_18 = arith.constant 1 : index
    %c0_19 = arith.constant 0 : index
    %25 = vector.load %arg2[%c1_17, %c1_18, %c0_19] : memref<2x2x64xf32, #tpu.memory_space<vmem>>, vector<1x1x64xf32>
    %26 = vector.shape_cast %25 : vector<1x1x64xf32> to vector<1x64xf32>
    %c1_20 = arith.constant 1 : index
    %c0_21 = arith.constant 0 : index
    %c0_22 = arith.constant 0 : index
    %27 = vector.load %arg1[%c1_20, %c0_21, %c0_22] : memref<2x16x64xbf16, #tpu.memory_space<vmem>>, vector<1x16x64xbf16>
    %28 = vector.shape_cast %27 : vector<1x16x64xbf16> to vector<16x64xbf16>
    %29 = arith.extf %28 : vector<16x64xbf16> to vector<16x64xf32>
    %30 = vector.broadcast %24 : vector<1x64xf32> to vector<16x64xf32>
    %31 = arith.mulf %29, %30 : vector<16x64xf32>
    %32 = vector.broadcast %26 : vector<1x64xf32> to vector<16x64xf32>
    %33 = arith.addf %31, %32 : vector<16x64xf32>
    %cst_23 = arith.constant 0.000000e+00 : f32
    %34 = vector.broadcast %cst_23 : f32 to vector<16x64xf32>
    %35 = arith.maximumf %33, %34 : vector<16x64xf32>
    %36 = vector.extract_strided_slice %35 {offsets = [0, 0], sizes = [4, 64], strides = [1, 1]} : vector<16x64xf32> to vector<4x64xf32>
    %c72 = arith.constant 72 : index
    %c0_24 = arith.constant 0 : index
    %37 = vector.load %arg8[%c72, %c0_24] : memref<144x64xf32, #tpu.memory_space<vmem>>, vector<4x64xf32>
    tpu.vector_store %arg8[%c72, %c0_24], %36 {strides = array<i32>} : memref<144x64xf32, #tpu.memory_space<vmem>>, vector<4x64xf32>,
    %38 = vector.extract_strided_slice %35 {offsets = [4, 0], sizes = [4, 64], strides = [1, 1]} : vector<16x64xf32> to vector<4x64xf32>
    %c80 = arith.constant 80 : index
    %c0_25 = arith.constant 0 : index
    %39 = vector.load %arg8[%c80, %c0_25] : memref<144x64xf32, #tpu.memory_space<vmem>>, vector<4x64xf32>
    tpu.vector_store %arg8[%c80, %c0_25], %38 {strides = array<i32>} : memref<144x64xf32, #tpu.memory_space<vmem>>, vector<4x64xf32>,
    %40 = vector.extract_strided_slice %35 {offsets = [8, 0], sizes = [4, 64], strides = [1, 1]} : vector<16x64xf32> to vector<4x64xf32>
    %c88 = arith.constant 88 : index
    %c0_26 = arith.constant 0 : index
    %41 = vector.load %arg8[%c88, %c0_26] : memref<144x64xf32, #tpu.memory_space<vmem>>, vector<4x64xf32>
    tpu.vector_store %arg8[%c88, %c0_26], %40 {strides = array<i32>} : memref<144x64xf32, #tpu.memory_space<vmem>>, vector<4x64xf32>,
    %42 = vector.extract_strided_slice %35 {offsets = [12, 0], sizes = [4, 64], strides = [1, 1]} : vector<16x64xf32> to vector<4x64xf32>
    %c96 = arith.constant 96 : index
    %c0_27 = arith.constant 0 : index
    %43 = vector.load %arg8[%c96, %c0_27] : memref<144x64xf32, #tpu.memory_space<vmem>>, vector<4x64xf32>
    tpu.vector_store %arg8[%c96, %c0_27], %42 {strides = array<i32>} : memref<144x64xf32, #tpu.memory_space<vmem>>, vector<4x64xf32>,
    %c0_28 = arith.constant 0 : index
    %c0_29 = arith.constant 0 : index
    %44 = vector.load %arg4[%c0_28, %c0_29] : memref<1x128xf32, #tpu.memory_space<vmem>>, vector<1x128xf32>
    %cst_30 = arith.constant 0.000000e+00 : f32
    %45 = vector.broadcast %cst_30 : f32 to vector<1x128xf32>
    %cst_31 = arith.constant 0.000000e+00 : f32
    %46 = vector.broadcast %cst_31 : f32 to vector<1x128xf32>
    %c16_32 = arith.constant 16 : index
    %c0_33 = arith.constant 0 : index
    %47 = vector.load %arg8[%c16_32, %c0_33] : memref<144x64xf32, #tpu.memory_space<vmem>>, vector<112x64xf32>
    %c15 = arith.constant 15 : index
    %c0_34 = arith.constant 0 : index
    %48 = vector.load %arg8[%c15, %c0_34] : memref<144x64xf32, #tpu.memory_space<vmem>>, vector<112x64xf32>
    %c8 = arith.constant 8 : index
    %c0_35 = arith.constant 0 : index
    %49 = vector.load %arg8[%c8, %c0_35] : memref<144x64xf32, #tpu.memory_space<vmem>>, vector<112x64xf32>
    %c7 = arith.constant 7 : index
    %c0_36 = arith.constant 0 : index
    %50 = vector.load %arg8[%c7, %c0_36] : memref<144x64xf32, #tpu.memory_space<vmem>>, vector<112x64xf32>
    %51 = tpu.concatenate %47, %48, %49, %50 in 1 : vector<112x64xf32>, vector<112x64xf32>, vector<112x64xf32>, vector<112x64xf32> -> vector<112x256xf32>
    %52 = arith.truncf %51 : vector<112x256xf32> to vector<112x256xbf16>
    %c0_37 = arith.constant 0 : index
    %c0_38 = arith.constant 0 : index
    %c0_39 = arith.constant 0 : index
    %53 = vector.load %arg3[%c0_37, %c0_38, %c0_39] : memref<4x256x32xbf16, #tpu.memory_space<vmem>>, vector<1x256x32xbf16>
    %54 = vector.shape_cast %53 : vector<1x256x32xbf16> to vector<256x32xbf16>
    %cst_40 = arith.constant dense<0.000000e+00> : vector<112x32xf32>
    %55 = tpu.matmul %52, %54, %cst_40 {dimension_numbers = #tpu.dot_dimension_numbers<[1], [0], [0], [1], [0, 0, 1, 1], [], []>} : vector<112x256xbf16>, vector<256x32xbf16>, vector<112x32xf32> -> vector<112x32xf32>
    %c17 = arith.constant 17 : index
    %c0_41 = arith.constant 0 : index
    %56 = vector.load %arg8[%c17, %c0_41] : memref<144x64xf32, #tpu.memory_space<vmem>>, vector<112x64xf32>
    %c16_42 = arith.constant 16 : index
    %c0_43 = arith.constant 0 : index
    %57 = vector.load %arg8[%c16_42, %c0_43] : memref<144x64xf32, #tpu.memory_space<vmem>>, vector<112x64xf32>
    %c9 = arith.constant 9 : index
    %c0_44 = arith.constant 0 : index
    %58 = vector.load %arg8[%c9, %c0_44] : memref<144x64xf32, #tpu.memory_space<vmem>>, vector<112x64xf32>
    %c8_45 = arith.constant 8 : index
    %c0_46 = arith.constant 0 : index
    %59 = vector.load %arg8[%c8_45, %c0_46] : memref<144x64xf32, #tpu.memory_space<vmem>>, vector<112x64xf32>
    %60 = tpu.concatenate %56, %57, %58, %59 in 1 : vector<112x64xf32>, vector<112x64xf32>, vector<112x64xf32>, vector<112x64xf32> -> vector<112x256xf32>
    %61 = arith.truncf %60 : vector<112x256xf32> to vector<112x256xbf16>
    %c1_47 = arith.constant 1 : index
    %c0_48 = arith.constant 0 : index
    %c0_49 = arith.constant 0 : index
    %62 = vector.load %arg3[%c1_47, %c0_48, %c0_49] : memref<4x256x32xbf16, #tpu.memory_space<vmem>>, vector<1x256x32xbf16>
    %63 = vector.shape_cast %62 : vector<1x256x32xbf16> to vector<256x32xbf16>
    %cst_50 = arith.constant dense<0.000000e+00> : vector<112x32xf32>
    %64 = tpu.matmul %61, %63, %cst_50 {dimension_numbers = #tpu.dot_dimension_numbers<[1], [0], [0], [1], [0, 0, 1, 1], [], []>} : vector<112x256xbf16>, vector<256x32xbf16>, vector<112x32xf32> -> vector<112x32xf32>
    %c24_51 = arith.constant 24 : index
    %c0_52 = arith.constant 0 : index
    %65 = vector.load %arg8[%c24_51, %c0_52] : memref<144x64xf32, #tpu.memory_space<vmem>>, vector<112x64xf32>
    %c23 = arith.constant 23 : index
    %c0_53 = arith.constant 0 : index
    %66 = vector.load %arg8[%c23, %c0_53] : memref<144x64xf32, #tpu.memory_space<vmem>>, vector<112x64xf32>
    %c16_54 = arith.constant 16 : index
    %c0_55 = arith.constant 0 : index
    %67 = vector.load %arg8[%c16_54, %c0_55] : memref<144x64xf32, #tpu.memory_space<vmem>>, vector<112x64xf32>
    %c15_56 = arith.constant 15 : index
    %c0_57 = arith.constant 0 : index
    %68 = vector.load %arg8[%c15_56, %c0_57] : memref<144x64xf32, #tpu.memory_space<vmem>>, vector<112x64xf32>
    %69 = tpu.concatenate %65, %66, %67, %68 in 1 : vector<112x64xf32>, vector<112x64xf32>, vector<112x64xf32>, vector<112x64xf32> -> vector<112x256xf32>
    %70 = arith.truncf %69 : vector<112x256xf32> to vector<112x256xbf16>
    %c2 = arith.constant 2 : index
    %c0_58 = arith.constant 0 : index
    %c0_59 = arith.constant 0 : index
    %71 = vector.load %arg3[%c2, %c0_58, %c0_59] : memref<4x256x32xbf16, #tpu.memory_space<vmem>>, vector<1x256x32xbf16>
    %72 = vector.shape_cast %71 : vector<1x256x32xbf16> to vector<256x32xbf16>
    %cst_60 = arith.constant dense<0.000000e+00> : vector<112x32xf32>
    %73 = tpu.matmul %70, %72, %cst_60 {dimension_numbers = #tpu.dot_dimension_numbers<[1], [0], [0], [1], [0, 0, 1, 1], [], []>} : vector<112x256xbf16>, vector<256x32xbf16>, vector<112x32xf32> -> vector<112x32xf32>
    %c25 = arith.constant 25 : index
    %c0_61 = arith.constant 0 : index
    %74 = vector.load %arg8[%c25, %c0_61] : memref<144x64xf32, #tpu.memory_space<vmem>>, vector<112x64xf32>
    %c24_62 = arith.constant 24 : index
    %c0_63 = arith.constant 0 : index
    %75 = vector.load %arg8[%c24_62, %c0_63] : memref<144x64xf32, #tpu.memory_space<vmem>>, vector<112x64xf32>
    %c17_64 = arith.constant 17 : index
    %c0_65 = arith.constant 0 : index
    %76 = vector.load %arg8[%c17_64, %c0_65] : memref<144x64xf32, #tpu.memory_space<vmem>>, vector<112x64xf32>
    %c16_66 = arith.constant 16 : index
    %c0_67 = arith.constant 0 : index
    %77 = vector.load %arg8[%c16_66, %c0_67] : memref<144x64xf32, #tpu.memory_space<vmem>>, vector<112x64xf32>
    %78 = tpu.concatenate %74, %75, %76, %77 in 1 : vector<112x64xf32>, vector<112x64xf32>, vector<112x64xf32>, vector<112x64xf32> -> vector<112x256xf32>
    %79 = arith.truncf %78 : vector<112x256xf32> to vector<112x256xbf16>
    %c3 = arith.constant 3 : index
    %c0_68 = arith.constant 0 : index
    %c0_69 = arith.constant 0 : index
    %80 = vector.load %arg3[%c3, %c0_68, %c0_69] : memref<4x256x32xbf16, #tpu.memory_space<vmem>>, vector<1x256x32xbf16>
    %81 = vector.shape_cast %80 : vector<1x256x32xbf16> to vector<256x32xbf16>
    %cst_70 = arith.constant dense<0.000000e+00> : vector<112x32xf32>
    %82 = tpu.matmul %79, %81, %cst_70 {dimension_numbers = #tpu.dot_dimension_numbers<[1], [0], [0], [1], [0, 0, 1, 1], [], []>} : vector<112x256xbf16>, vector<256x32xbf16>, vector<112x32xf32> -> vector<112x32xf32>
    %83 = tpu.concatenate %55, %64, %73, %82 in 1 : vector<112x32xf32>, vector<112x32xf32>, vector<112x32xf32>, vector<112x32xf32> -> vector<112x128xf32>
    %84 = vector.broadcast %44 : vector<1x128xf32> to vector<112x128xf32>
    %85 = arith.addf %83, %84 : vector<112x128xf32>
    %86 = tpu.iota {dimensions = array<i32: 0>} : vector<112x1xi32>
    %c0_i32 = arith.constant 0 : i32
    %87 = vector.broadcast %c0_i32 : i32 to vector<112x1xi32>
    %88 = arith.addi %87, %86 : vector<112x1xi32>
    %c56_i32 = arith.constant 56 : i32
    %c0_i32_71 = arith.constant 0 : i32
    %89 = arith.cmpi eq, %c56_i32, %c0_i32_71 : i32
    %c1_i32 = arith.constant 1 : i32
    %90 = arith.select %89, %c1_i32, %c56_i32 : i32
    %91 = vector.broadcast %90 : i32 to vector<112x1xi32>
    %92 = arith.remsi %88, %91 : vector<112x1xi32>
    %c0_i32_72 = arith.constant 0 : i32
    %93 = vector.broadcast %c0_i32_72 : i32 to vector<112x1xi32>
    %94 = arith.cmpi ne, %92, %93 : vector<112x1xi32>
    %c0_i32_73 = arith.constant 0 : i32
    %95 = vector.broadcast %c0_i32_73 : i32 to vector<112x1xi32>
    %96 = arith.cmpi slt, %92, %95 : vector<112x1xi32>
    %c0_i32_74 = arith.constant 0 : i32
    %97 = arith.cmpi slt, %90, %c0_i32_74 : i32
    %98 = vector.broadcast %97 : i1 to vector<112x1xi1>
    %99 = vector.broadcast %98 : vector<112x1xi1> to vector<112x1xi1>
    %100 = arith.xori %96, %99 : vector<112x1xi1>
    %101 = arith.andi %100, %94 : vector<112x1xi1>
    %102 = vector.broadcast %90 : i32 to vector<112x1xi32>
    %103 = arith.addi %92, %102 : vector<112x1xi32>
    %104 = arith.select %101, %103, %92 : vector<112x1xi1>, vector<112x1xi32>
    %c32_i32 = arith.constant 32 : i32
    %105 = vector.broadcast %c32_i32 : i32 to vector<112x1xi32>
    %106 = arith.cmpi slt, %104, %105 : vector<112x1xi32>
    %c8_i32 = arith.constant 8 : i32
    %c0_i32_75 = arith.constant 0 : i32
    %107 = arith.cmpi eq, %c8_i32, %c0_i32_75 : i32
    %c1_i32_76 = arith.constant 1 : i32
    %108 = arith.select %107, %c1_i32_76, %c8_i32 : i32
    %109 = vector.broadcast %108 : i32 to vector<112x1xi32>
    %110 = arith.remsi %104, %109 : vector<112x1xi32>
    %c0_i32_77 = arith.constant 0 : i32
    %111 = vector.broadcast %c0_i32_77 : i32 to vector<112x1xi32>
    %112 = arith.cmpi ne, %110, %111 : vector<112x1xi32>
    %c0_i32_78 = arith.constant 0 : i32
    %113 = vector.broadcast %c0_i32_78 : i32 to vector<112x1xi32>
    %114 = arith.cmpi slt, %110, %113 : vector<112x1xi32>
    %c0_i32_79 = arith.constant 0 : i32
    %115 = arith.cmpi slt, %108, %c0_i32_79 : i32
    %116 = vector.broadcast %115 : i1 to vector<112x1xi1>
    %117 = vector.broadcast %116 : vector<112x1xi1> to vector<112x1xi1>
    %118 = arith.xori %114, %117 : vector<112x1xi1>
    %119 = arith.andi %118, %112 : vector<112x1xi1>
    %120 = vector.broadcast %108 : i32 to vector<112x1xi32>
    %121 = arith.addi %110, %120 : vector<112x1xi32>
    %122 = arith.select %119, %121, %110 : vector<112x1xi1>, vector<112x1xi32>
    %c4_i32 = arith.constant 4 : i32
    %123 = vector.broadcast %c4_i32 : i32 to vector<112x1xi32>
    %124 = arith.cmpi slt, %122, %123 : vector<112x1xi32>
    %125 = arith.andi %106, %124 : vector<112x1xi1>
    %126 = arith.extui %125 : vector<112x1xi1> to vector<112x1xi32>
    %127 = arith.sitofp %126 : vector<112x1xi32> to vector<112x1xf32>
    %128 = vector.broadcast %127 : vector<112x1xf32> to vector<112x128xf32>
    %129 = arith.mulf %85, %128 : vector<112x128xf32>
    %cst_80 = arith.constant dense<0.000000e+00> : vector<128xf32>
    %130 = vector.multi_reduction <add>, %129, %cst_80 [0] : vector<112x128xf32> to vector<128xf32>
    %131 = vector.shape_cast %130 : vector<128xf32> to vector<1x128xf32>
    %132 = arith.addf %45, %131 : vector<1x128xf32>
    %133 = arith.mulf %129, %129 : vector<112x128xf32>
    %cst_81 = arith.constant dense<0.000000e+00> : vector<128xf32>
    %134 = vector.multi_reduction <add>, %133, %cst_81 [0] : vector<112x128xf32> to vector<128xf32>
    %135 = vector.shape_cast %134 : vector<128xf32> to vector<1x128xf32>
    %136 = arith.addf %46, %135 : vector<1x128xf32>
    %137 = arith.truncf %85 : vector<112x128xf32> to vector<112x128xbf16>
    %c0_82 = arith.constant 0 : index
    %c0_83 = arith.constant 0 : index
    %138 = vector.load %arg5[%c0_82, %c0_83] : memref<112x128xbf16, #tpu.memory_space<vmem>>, vector<112x128xbf16>
    tpu.vector_store %arg5[%c0_82, %c0_83], %137 {strides = array<i32>} : memref<112x128xbf16, #tpu.memory_space<vmem>>, vector<112x128xbf16>,
    %c0_84 = arith.constant 0 : index
    %c0_85 = arith.constant 0 : index
    %c0_86 = arith.constant 0 : index
    %139 = vector.load %arg6[%c0_84, %c0_85, %c0_86] : memref<1x1x128xf32, #tpu.memory_space<vmem>>, vector<1x1x128xf32>
    %140 = vector.shape_cast %139 : vector<1x1x128xf32> to vector<1x128xf32>
    %141 = vector.shape_cast %132 : vector<1x128xf32> to vector<1x1x128xf32>
    tpu.vector_store %arg6[%c0_84, %c0_85, %c0_86], %141 {strides = array<i32>} : memref<1x1x128xf32, #tpu.memory_space<vmem>>, vector<1x1x128xf32>,
    %c0_87 = arith.constant 0 : index
    %c0_88 = arith.constant 0 : index
    %c0_89 = arith.constant 0 : index
    %142 = vector.load %arg7[%c0_87, %c0_88, %c0_89] : memref<1x1x128xf32, #tpu.memory_space<vmem>>, vector<1x1x128xf32>
    %143 = vector.shape_cast %142 : vector<1x1x128xf32> to vector<1x128xf32>
    %144 = vector.shape_cast %136 : vector<1x128xf32> to vector<1x1x128xf32>
    tpu.vector_store %arg7[%c0_87, %c0_88, %c0_89], %144 {strides = array<i32>} : memref<1x1x128xf32, #tpu.memory_space<vmem>>, vector<1x1x128xf32>,
    return
  }
  func.func @transform_0(%arg0: i32) -> (i32, i32, i32) {
    %c0_i32 = arith.constant 0 : i32
    %c0_i32_0 = arith.constant 0 : i32
    %c0_i32_1 = arith.constant 0 : i32
    return %arg0, %c0_i32, %c0_i32_0 : i32, i32, i32
  }
  func.func @transform_1(%arg0: i32) -> (i32, i32, i32) {
    %c0_i32 = arith.constant 0 : i32
    %c0_i32_0 = arith.constant 0 : i32
    %c0_i32_1 = arith.constant 0 : i32
    return %arg0, %c0_i32, %c0_i32_0 : i32, i32, i32
  }
  func.func @transform_2(%arg0: i32) -> (i32, i32, i32) {
    %c0_i32 = arith.constant 0 : i32
    %c0_i32_0 = arith.constant 0 : i32
    %c0_i32_1 = arith.constant 0 : i32
    %c0_i32_2 = arith.constant 0 : i32
    return %c0_i32, %c0_i32_0, %c0_i32_1 : i32, i32, i32
  }
  func.func @transform_3(%arg0: i32) -> (i32, i32) {
    %c0_i32 = arith.constant 0 : i32
    %c0_i32_0 = arith.constant 0 : i32
    %c0_i32_1 = arith.constant 0 : i32
    return %c0_i32, %c0_i32_0 : i32, i32
  }
  func.func @transform_4(%arg0: i32) -> (i32, i32) {
    %c0_i32 = arith.constant 0 : i32
    %c0_i32_0 = arith.constant 0 : i32
    return %arg0, %c0_i32 : i32, i32
  }
  func.func @transform_5(%arg0: i32) -> (i32, i32, i32) {
    %c0_i32 = arith.constant 0 : i32
    %c0_i32_0 = arith.constant 0 : i32
    %c0_i32_1 = arith.constant 0 : i32
    return %arg0, %c0_i32, %c0_i32_0 : i32, i32, i32
  }
  func.func @transform_6(%arg0: i32) -> (i32, i32, i32) {
    %c0_i32 = arith.constant 0 : i32
    %c0_i32_0 = arith.constant 0 : i32
    %c0_i32_1 = arith.constant 0 : i32
    return %arg0, %c0_i32, %c0_i32_0 : i32, i32, i32
  }
}

</mosaic_0001>

<bundles_post_ra>
// kernel: tpu_custom_call.1
= control target key start
LH: loop header
LB: loop body
LE: loop exit
PB: predicated region body
PF: predicated region fallthrough
CT: control target
= control target key end

     0   :  { %12 = vsyncpa [#allocation4], 0  ;;  %vm4642_vm0 = vcmask 523264   ;;  %v4643_v1 = vmov 0.0   ;;  %vm64_vm1 = vcmask 523268   ;;  %vm62_vm2 = vcmask 519168   ;;  %s4635_s0 = inlined_call_operand.vmem [shape: bf16[2,16,64], index: 0, kind: input, shape index: {}]   ;;  %s4636_s1 = inlined_call_operand.vmem [shape: f32[2,2,64], index: 1, kind: input, shape index: {}]   ;;  %s4637_s2 = inlined_call_operand.vmem [shape: bf16[4,256,32], index: 2, kind: input, shape index: {}]   ;;  %s4638_s3 = inlined_call_operand.vmem [shape: f32[1,128], index: 3, kind: input, shape index: {}]   ;;  %s4639_s4 = inlined_call_operand.hbm [shape: bf16[112,128], index: 4, kind: output, shape index: {0}]   ;;  %s4640_s5 = inlined_call_operand.hbm [shape: f32[1,1,128], index: 5, kind: output, shape index: {1}]   ;;  %s4641_s6 = inlined_call_operand.hbm [shape: f32[1,1,128], index: 6, kind: output, shape index: {2}]  }
   0x1   :  { %v2319_v0 = vld [vmem:[%s4636_s1] ss:$0 sm:$0xff]  ;;  %25 = vst.msk [vmem:[#allocation2 + $0x8] sm:$0xff] %vm4642_vm0, %v4643_v1  ;;  %27 = vst.msk [vmem:[#allocation2 + $0x18] sm:$0xff] %vm4642_vm0, %v4643_v1  ;;  %v2320_v2 = vld [vmem:[%s4636_s1 + $0x1] ss:$0 sm:$0xff] }
   0x2   :  { %v2545_v3 = vld [vmem:[%s4635_s0] sm:$0xff]   ;;  %24 = vst.msk [vmem:[#allocation2] sm:$0xff] %vm4642_vm0, %v4643_v1  ;;  %26 = vst.msk [vmem:[#allocation2 + $0x10] sm:$0xff] %vm4642_vm0, %v4643_v1  ;;  %v2587_v8 = vld [vmem:[%s4635_s0 + $0x8] sm:$0xff]   ;;  %s3137_s25 = smov 64  }
   0x3   :  { %28 = vst.msk [vmem:[#allocation2 + $0x20] sm:$0xff] %vm4642_vm0, %v4643_v1  ;;  %29 = vst.msk [vmem:[#allocation2 + $0x28] sm:$0xff] %vm4642_vm0, %v4643_v1  ;;  %v2325_v4 = vld [vmem:[%s4636_s1 + $0x2] ss:$0 sm:$0xff]  ;;  %v2546_v5 = vunpack.c.l.bf16 %v2545_v3  ;;  %v2547_v6 = vunpack.c.h.bf16 %v2545_v3  ;;  %v2326_v7 = vld [vmem:[%s4636_s1 + $0x3] ss:$0 sm:$0xff]  ;;  %v2550_v9 = vunpack.c.l.bf16 %v2587_v8  ;;  %v2551_v10 = vunpack.c.h.bf16 %v2587_v8 }
   0x4   :  { %30 = vst.msk [vmem:[#allocation2 + $0x30] sm:$0xff] %vm4642_vm0, %v4643_v1  ;;  %31 = vst.msk [vmem:[#allocation2 + $0x38] sm:$0xff] %vm4642_vm0, %v4643_v1  ;;  %v3008_v11 = vld [vmem:[%s4637_s2 + $0x78] sm:$0xff]   ;;  %v3012_v23 = vld [vmem:[%s4637_s2 + $0x70] sm:$0xff]  }
   0x5   :  { %32 = vst.msk [vmem:[#allocation2 + $0x40] sm:$0xff] %vm4642_vm0, %v4643_v1  ;;  %33 = vst.msk [vmem:[#allocation2 + $0x48] sm:$0xff] %vm4642_vm0, %v4643_v1  ;;  %v52_v12 = vmul.f32 %v2546_v5, %v2319_v0  ;;  %v53_v13 = vmul.f32 %v2547_v6, %v2319_v0  ;;  %v3009_v14 = vld [vmem:[%s4637_s2 + $0xf8] sm:$0xff]   ;;  %v80_v15 = vmul.f32 %v2550_v9, %v2325_v4  ;;  %2594 = vmatprep.subr.bf16.mxu0 %v3008_v11  ;;  %v3013_v30 = vld [vmem:[%s4637_s2 + $0xf0] sm:$0xff]  }
   0x6   :  { %34 = vst.msk [vmem:[#allocation2 + $0x50] sm:$0xff] %vm4642_vm0, %v4643_v1  ;;  %35 = vst.msk [vmem:[#allocation2 + $0x58] sm:$0xff] %vm4642_vm0, %v4643_v1  ;;  %v81_v16 = vmul.f32 %v2551_v10, %v2325_v4  ;;  %v3010_v17 = vld [vmem:[%s4637_s2 + $0x38] sm:$0xff]   ;;  %2652 = vmatprep.subr.bf16.mxu1 %v3009_v14  ;;  %v3014_v31 = vld [vmem:[%s4637_s2 + $0x30] sm:$0xff]  }
   0x7   :  { %36 = vst.msk [vmem:[#allocation2 + $0x60] sm:$0xff] %vm4642_vm0, %v4643_v1  ;;  %37 = vst.msk [vmem:[#allocation2 + $0x68] sm:$0xff] %vm4642_vm0, %v4643_v1  ;;  %v58_v18 = vadd.f32 %v2320_v2, %v52_v12  ;;  %v59_v19 = vadd.f32 %v2320_v2, %v53_v13  ;;  %v3011_v20 = vld [vmem:[%s4637_s2 + $0xb8] sm:$0xff]   ;;  %v86_v21 = vadd.f32 %v2326_v7, %v80_v15  ;;  %2595 = vmatpush3.bf16.msra.mxu0 %v3010_v17  ;;  %v3015_v32 = vld [vmem:[%s4637_s2 + $0xb0] sm:$0xff]  }
   0x8   :  { %38 = vst.msk [vmem:[#allocation2 + $0x70] sm:$0xff] %vm4642_vm0, %v4643_v1  ;;  %39 = vst.msk [vmem:[#allocation2 + $0x78] sm:$0xff] %vm4642_vm0, %v4643_v1  ;;  %v87_v22 = vadd.f32 %v2326_v7, %v81_v16  ;;  %2653 = vmatpush3.bf16.msra.mxu1 %v3011_v20  ;;  %2596 = vmatprep.subr.bf16.mxu0 %v3012_v23  ;;  %v3257_v28 = vld [vmem:[#allocation2 + $0x8] sm:$0xff]  ;;  %v3020_v57 = vld [vmem:[%s4637_s2 + $0x60] sm:$0xff]  }
   0x9   :  { %40 = vst.msk [vmem:[#allocation2 + $0x80] sm:$0xff] %vm4642_vm0, %v4643_v1  ;;  %41 = vst.msk [vmem:[#allocation2 + $0x88] sm:$0xff] %vm4642_vm0, %v4643_v1  ;;  %v60_v24 = vmax.f32 %v58_v18, 0.0  ;;  %v61_v25 = vmax.f32 %v59_v19, 0.0  ;;  %v88_v26 = vmax.f32 %v86_v21, 0.0  ;;  %v124_v29 = vld [vmem:[#allocation2 + $0x7] sm:$0xff]  ;;  %2654 = vmatprep.subr.bf16.mxu1 %v3013_v30 }
   0xa   :  { %v89_v27 = vmax.f32 %v87_v22, 0.0  ;;  %v3016_v33 = vld [vmem:[%s4637_s2 + $0x68] sm:$0xff]   ;;  %v3021_v58 = vld [vmem:[%s4637_s2 + $0xe0] sm:$0xff]   ;;  %v3024_v4 = vld [vmem:[%s4637_s2 + $0x58] sm:$0xff]  }
   0xb   :  { %65 = vst.msk [vmem:[#allocation2 + $0x14] sm:$0xf0] %vm64_vm1, %v60_v24  ;;  %67 = vst.msk [vmem:[#allocation2 + $0x24] sm:$0xf0] %vm64_vm1, %v61_v25  ;;  %2597 = vmatpush3.bf16.msra.mxu0 %v3014_v31  ;;  %v3289_v44 = vld [vmem:[#allocation2 + $0x2f] sm:$0xff]  ;;  %v3295_v47 = vld [vmem:[#allocation2 + $0x37] sm:$0xff] }
   0xc   :  { %63 = vst.msk [vmem:[#allocation2 + $0x10] sm:$0xf] %vm62_vm2, %v60_v24  ;;  %66 = vst.msk [vmem:[#allocation2 + $0x20] sm:$0xf] %vm62_vm2, %v61_v25  ;;  %2655 = vmatpush3.bf16.msra.mxu1 %v3015_v32  ;;  %2598 = vmatprep.subr.bf16.mxu0 %v3016_v33  ;;  %v3017_v48 = vld [vmem:[%s4637_s2 + $0xe8] sm:$0xff]   ;;  %v3300_v49 = vld [vmem:[#allocation2 + $0x30] sm:$0xff]  ;;  %v2888_v54 = vpack.i.bf16 %v3295_v47, %v3289_v44 }
   0xd   :  { %90 = vst.msk [vmem:[#allocation2 + $0x48] sm:$0xf] %vm62_vm2, %v88_v26  ;;  %92 = vst.msk [vmem:[#allocation2 + $0x58] sm:$0xf] %vm62_vm2, %v89_v27  ;;  %v3302_v50 = vld [vmem:[#allocation2 + $0x38] sm:$0xff]  ;;  %v3018_v52 = vld [vmem:[%s4637_s2 + $0x28] sm:$0xff]   ;;  %2656 = vmatprep.subr.bf16.mxu1 %v3017_v48 }
   0xe   :  { %91 = vst.msk [vmem:[#allocation2 + $0x4c] sm:$0xf0] %vm64_vm1, %v88_v26  ;;  %93 = vst.msk [vmem:[#allocation2 + $0x5c] sm:$0xf0] %vm64_vm1, %v89_v27  ;;  %v3304_v51 = vld [vmem:[#allocation2 + $0x3f] sm:$0xff]  ;;  %v3019_v56 = vld [vmem:[%s4637_s2 + $0xa8] sm:$0xff]   ;;  %v2893_v63 = vpack.i.bf16 %v3302_v50, %v3300_v49 }
   0xf   :  { %2599 = vmatpush3.bf16.msra.mxu0 %v3018_v52  ;;  %v3326_v59 = vld [vmem:[#allocation2 + $0x40] sm:$0xff]  ;;  %v3025_v8 = vld [vmem:[%s4637_s2 + $0xd8] sm:$0xff]   ;;  %v3028_v14 = vld [vmem:[%s4637_s2 + $0x50] sm:$0xff]  }
  0x10   :  { %2657 = vmatpush3.bf16.msra.mxu1 %v3019_v56  ;;  %2600 = vmatprep.subr.bf16.mxu0 %v3020_v57  ;;  %v3022_v62 = vld [vmem:[%s4637_s2 + $0x20] sm:$0xff]   ;;  %v3026_v12 = vld [vmem:[%s4637_s2 + $0x18] sm:$0xff]   ;;  %v3375_v15 = vld [vmem:[#allocation2 + $0x68] sm:$0xff] }
  0x11   :  { %2658 = vmatprep.subr.bf16.mxu1 %v3021_v58  ;;  %v3023_v3 = vld [vmem:[%s4637_s2 + $0xa0] sm:$0xff]   ;;  %v3027_v13 = vld [vmem:[%s4637_s2 + $0x98] sm:$0xff]   ;;  %v3377_v16 = vld [vmem:[#allocation2 + $0x6f] sm:$0xff] }
  0x12   :  { %v3271_v34 = vld [vmem:[#allocation2 + $0x18] sm:$0xff]  ;;  %v3277_v39 = vld [vmem:[#allocation2 + $0x27] sm:$0xff]  ;;  %v3029_v18 = vld [vmem:[%s4637_s2 + $0xd0] sm:$0xff]  }
  0x13   :  { %v109_v35 = vld [vmem:[#allocation2 + $0xf] sm:$0xff]  ;;  %v3273_v36 = vld [vmem:[#allocation2 + $0x1f] sm:$0xff]  ;;  %v2873_v37 = vpack.i.bf16 %v3271_v34, %v3257_v28  ;;  %v3281_v41 = vld [vmem:[#allocation2 + $0x17] sm:$0xff]  ;;  %2601 = vmatpush3.bf16.msra.mxu0 %v3022_v62  ;;  %v2948_v48 = vpack.i.bf16 %v3289_v44, %v3277_v39 }
  0x14   :  { %v2863_v38 = vpack.i.bf16 %v124_v29, %v109_v35  ;;  %v3279_v40 = vld [vmem:[#allocation2 + $0x10] sm:$0xff]  ;;  %v2878_v42 = vpack.i.bf16 %v3277_v39, %v3273_v36  ;;  %v3291_v45 = vld [vmem:[#allocation2 + $0x20] sm:$0xff]  ;;  %v3293_v46 = vld [vmem:[#allocation2 + $0x28] sm:$0xff]  ;;  %2659 = vmatpush3.bf16.msra.mxu1 %v3023_v3  ;;  %2602 = vmatprep.subr.bf16.mxu0 %v3024_v4  ;;  %v2963_v39 = vpack.i.bf16 %v3326_v59, %v3302_v50 }
  0x15   :  { %2874 = vrot.lane.b32.xlu1 %v2873_v37, %s3137_s25  ;;  %v2868_v43 = vpack.i.bf16 %v3279_v40, %v3281_v41  ;;  %v2883_v53 = vpack.i.bf16 %v3293_v46, %v3291_v45  ;;  %v3315_v55 = vld [vmem:[#allocation2 + $0x47] sm:$0xff]  ;;  %v3330_v61 = vld [vmem:[#allocation2 + $0x4f] sm:$0xff]  ;;  %v3341_v2 = vld [vmem:[#allocation2 + $0x57] sm:$0xff]  ;;  %2660 = vmatprep.subr.bf16.mxu1 %v3025_v8  ;;  %v2938_v37 = vpack.i.bf16 %v3273_v36, %v3281_v41 }
  0x16   :  { %2864 = vrot.lane.b32.xlu0 %v2863_v38, %s3137_s25  ;;  %v3328_v60 = vld [vmem:[#allocation2 + $0x48] sm:$0xff]  ;;  %v2898_v0 = vpack.i.bf16 %v3315_v55, %v3304_v51  ;;  %v3349_v5 = vld [vmem:[#allocation2 + $0x50] sm:$0xff]  ;;  %v3351_v6 = vld [vmem:[#allocation2 + $0x58] sm:$0xff]  ;;  %v2908_v10 = vpack.i.bf16 %v3341_v2, %v3330_v61  ;;  %v2943_v41 = vpack.i.bf16 %v3291_v45, %v3271_v34  ;;  %v2968_v44 = vpack.i.bf16 %v3330_v61, %v3315_v55 }
  0x17   :  { %v3353_v7 = vld [vmem:[#allocation2 + $0x67] sm:$0xff]  ;;  %v2903_v9 = vpack.i.bf16 %v3328_v60, %v3326_v59  ;;  %v3364_v11 = vld [vmem:[#allocation2 + $0x5f] sm:$0xff]  ;;  %2603 = vmatpush3.bf16.msra.mxu0 %v3026_v12  ;;  %v3379_v17 = vld [vmem:[#allocation2 + $0x77] sm:$0xff]  ;;  %v2913_v19 = vpack.i.bf16 %v3351_v6, %v3349_v5  ;;  %v2973_v56 = vpack.i.bf16 %v3349_v5, %v3328_v60 }
  0x18   :  { %2661 = vmatpush3.bf16.msra.mxu1 %v3027_v13  ;;  %v2918_v20 = vpack.i.bf16 %v3353_v7, %v3364_v11  ;;  %v3390_v21 = vld [vmem:[#allocation2 + $0x60] sm:$0xff]  ;;  %v3030_v22 = vld [vmem:[%s4637_s2 + $0x10] sm:$0xff]   ;;  %2604 = vmatprep.subr.bf16.mxu0 %v3028_v14  ;;  %v3032_v24 = vld [vmem:[%s4637_s2 + $0x48] sm:$0xff]   ;;  %v2928_v29 = vpack.i.bf16 %v3379_v17, %v3377_v16  ;;  %v2988_v55 = vpack.i.bf16 %v3377_v16, %v3353_v7 }
  0x19   :  { %2879 = vrot.lane.b32.xlu1 %v2878_v42, %s3137_s25  ;;  %2662 = vmatprep.subr.bf16.mxu1 %v3029_v18  ;;  %v3031_v23 = vld [vmem:[%s4637_s2 + $0x90] sm:$0xff]   ;;  %v3033_v26 = vld [vmem:[%s4637_s2 + $0xc8] sm:$0xff]   ;;  %v2923_v27 = vpack.i.bf16 %v3375_v15, %v3390_v21  ;;  %v3412_v30 = vld [vmem:[#allocation2 + $0x78] sm:$0xff] }
  0x1a   :  { %2869 = vrot.lane.b32.xlu0 %v2868_v43, %s3137_s25  ;;  %v3401_v25 = vld [vmem:[#allocation2 + $0x70] sm:$0xff]  ;;  %v3034_v31 = vld [vmem:[%s4637_s2 + $0x8] sm:$0xff]   ;;  %v3036_v33 = vld [vmem:[%s4637_s2 + $0x40] sm:$0xff]  }
  0x1b   :  { %2605 = vmatpush3.bf16.msra.mxu0 %v3030_v22  ;;  %v3035_v32 = vld [vmem:[%s4637_s2 + $0x88] sm:$0xff]   ;;  %v2933_v35 = vpack.i.bf16 %v3412_v30, %v3401_v25  ;;  %v3037_v38 = vld [vmem:[%s4637_s2 + $0xc0] sm:$0xff]   ;;  %v3040_v36 = vld [vmem:[%s4637_s2 + $0x178] sm:$0xff]   ;;  %v2993_v58 = vpack.i.bf16 %v3401_v25, %v3375_v15 }
  0x1c   :  { %2663 = vmatpush3.bf16.msra.mxu1 %v3031_v23  ;;  %2606 = vmatprep.subr.bf16.mxu0 %v3032_v24  ;;  %v3038_v42 = vld [vmem:[%s4637_s2] sm:$0xff]   ;;  %v3041_v52 = vld [vmem:[%s4637_s2 + $0x1f8] sm:$0xff]  }
  0x1d   :  { %2889 = vrot.lane.b32.xlu1 %v2888_v54, %s3137_s25  ;;  %2664 = vmatprep.subr.bf16.mxu1 %v3033_v26  ;;  %v3039_v43 = vld [vmem:[%s4637_s2 + $0x80] sm:$0xff]   ;;  %v2958_v54 = vpack.i.bf16 %v3304_v51, %v3295_v47  ;;  %v2978_v47 = vpack.i.bf16 %v3364_v11, %v3341_v2  ;;  %v2983_v51 = vpack.i.bf16 %v3390_v21, %v3351_v6 }
  0x1e   :  { %2884 = vrot.lane.b32.xlu0 %v2883_v53, %s3137_s25  ;;  %v2953_v53 = vpack.i.bf16 %v3300_v49, %v3293_v46  ;;  %v780_v57 = vld [vmem:[#allocation2 + $0x7f] sm:$0xff] }
  0x1f   :  { %2607 = vmatpush3.bf16.msra.mxu0 %v3034_v31  ;;  %v2998_v61 = vpack.i.bf16 %v780_v57, %v3379_v17  ;;  %v3479_v62 = vld [vmem:[#allocation2 + $0x80] sm:$0xff] }
  0x20   :  { %2665 = vmatpush3.bf16.msra.mxu1 %v3035_v32  ;;  %2608 = vmatprep.subr.bf16.mxu0 %v3036_v33 }
  0x21   :  { %2899 = vrot.lane.b32.xlu1 %v2898_v0, %s3137_s25  ;;  %2666 = vmatprep.subr.bf16.mxu1 %v3037_v38 }
  0x22   :  { %2894 = vrot.lane.b32.xlu0 %v2893_v63, %s3137_s25  ;;  %v3003_v63 = vpack.i.bf16 %v3479_v62, %v3412_v30 }
  0x23   :  { %2609 = vmatpush3.bf16.msra.mxu0 %v3038_v42 }
  0x24   :  { %2667 = vmatpush3.bf16.msra.mxu1 %v3039_v43  ;;  %2710 = vmatprep.subr.bf16.mxu0 %v3040_v36 }
  0x25   :  { %2909 = vrot.lane.b32.xlu1 %v2908_v10, %s3137_s25  ;;  %2768 = vmatprep.subr.bf16.mxu1 %v3041_v52 }
  0x26   :  { %2904 = vrot.lane.b32.xlu0 %v2903_v9, %s3137_s25 }
  0x29   :  { %2919 = vrot.lane.b32.xlu1 %v2918_v20, %s3137_s25 }
  0x2a   :  { %2914 = vrot.lane.b32.xlu0 %v2913_v19, %s3137_s25 }
  0x2d   :  { %2929 = vrot.lane.b32.xlu1 %v2928_v29, %s3137_s25 }
  0x2e   :  { %2924 = vrot.lane.b32.xlu0 %v2923_v27, %s3137_s25 }
  0x31   :  { %2939 = vrot.lane.b32.xlu1 %v2938_v37, %s3137_s25 }
  0x32   :  { %2934 = vrot.lane.b32.xlu0 %v2933_v35, %s3137_s25 }
  0x35   :  { %2949 = vrot.lane.b32.xlu1 %v2948_v48, %s3137_s25 }
  0x36   :  { %2944 = vrot.lane.b32.xlu0 %v2943_v41, %s3137_s25 }
  0x39   :  { %2959 = vrot.lane.b32.xlu1 %v2958_v54, %s3137_s25 }
  0x3a   :  { %2954 = vrot.lane.b32.xlu0 %v2953_v53, %s3137_s25 }
  0x3d   :  { %2969 = vrot.lane.b32.xlu1 %v2968_v44, %s3137_s25 }
  0x3e   :  { %2964 = vrot.lane.b32.xlu0 %v2963_v39, %s3137_s25 }
  0x41   :  { %2979 = vrot.lane.b32.xlu1 %v2978_v47, %s3137_s25 }
  0x42   :  { %2974 = vrot.lane.b32.xlu0 %v2973_v56, %s3137_s25 }
  0x45   :  { %2989 = vrot.lane.b32.xlu1 %v2988_v55, %s3137_s25 }
  0x46   :  { %2984 = vrot.lane.b32.xlu0 %v2983_v51, %s3137_s25 }
  0x49   :  { %2999 = vrot.lane.b32.xlu1 %v2998_v61, %s3137_s25 }
  0x4a   :  { %2994 = vrot.lane.b32.xlu0 %v2993_v58, %s3137_s25 }
  0x4e   :  { %3004 = vrot.lane.b32.xlu0 %v3003_v63, %s3137_s25 }
  0x4f   :  { %13 = vsyncpa [#allocation6], 0  ;;  %v3486_v9 = vld [vmem:[#allocation2 + $0x19] sm:$0xff]  ;;  %v445_v10 = vld [vmem:[#allocation2 + $0x9] sm:$0xff]  ;;  %s3139_s12 = smov 96  }
  0x50   :  { %v431_v17 = vld [vmem:[#allocation2 + $0x11] sm:$0xff]  ;;  %v3510_v42 = vld [vmem:[#allocation2 + $0x21] sm:$0xff]  ;;  %v3518_v53 = vld [vmem:[#allocation2 + $0x29] sm:$0xff] }
  0x51   :  { %v3042_v35 = vld [vmem:[%s4637_s2 + $0x138] sm:$0xff]   ;;  %v3044_v48 = vld [vmem:[%s4637_s2 + $0x170] sm:$0xff]  }
  0x52   :  { %v3043_v37 = vld [vmem:[%s4637_s2 + $0x1b8] sm:$0xff]   ;;  %v3045_v52 = vld [vmem:[%s4637_s2 + $0x1f0] sm:$0xff]  }
  0x53   :  { %v3046_v47 = vld [vmem:[%s4637_s2 + $0x130] sm:$0xff]  }
  0x54   :  { %v3047_v51 = vld [vmem:[%s4637_s2 + $0x1b0] sm:$0xff]  }
  0x55   :  { %v3536_v58 = vld [vmem:[#allocation2 + $0x31] sm:$0xff] }
  0x87   :  { %v2875_v0 = vpop.permute.xlu1 %2874 }
  0x88   :  { %v2865_v2 = vpop.permute.xlu0 %2864  ;;  %v2877_v3 = vunpack.i.h.bf16 %v2875_v0  ;;  %v2876_v4 = vunpack.i.l.bf16 %v2875_v0  ;;  %v3048_v0 = vld [vmem:[%s4637_s2 + $0x168] sm:$0xff]  }
  0x89   :  { %v2867_v7 = vunpack.i.h.bf16 %v2865_v2  ;;  %v2866_v8 = vunpack.i.l.bf16 %v2865_v2  ;;  %v3049_v2 = vld [vmem:[%s4637_s2 + $0x1e8] sm:$0xff]  }
  0x8a   :  { %v507_v18 = vsel %vm4642_vm0, %v3486_v9, %v2877_v3  ;;  %v520_v23 = vsel %vm4642_vm0, %v445_v10, %v2876_v4 }
  0x8b   :  { %v185_v11 = vsel %vm4642_vm0, %v3279_v40, %v2866_v8  ;;  %v199_v12 = vsel %vm4642_vm0, %v3257_v28, %v2867_v7  ;;  %v2880_v13 = vpop.permute.xlu1 %2879 }
  0x8c   :  { %v2870_v14 = vpop.permute.xlu0 %2869  ;;  %v201_v16 = vpack.c.bf16 %v185_v11, %v199_v12  ;;  %v2881_v19 = vunpack.i.l.bf16 %v2880_v13  ;;  %v2882_v24 = vunpack.i.h.bf16 %v2880_v13 }
  0x8d   :  { %v2872_v20 = vunpack.i.h.bf16 %v2870_v14  ;;  %v2871_v22 = vunpack.i.l.bf16 %v2870_v14  ;;  %v3050_v14 = vld [vmem:[%s4637_s2 + $0x128] sm:$0xff]  }
  0x8e   :  { %374 = vmatprep.mubr.bf16.mxu0 %v201_v16  ;;  %v187_v28 = vsel %vm4642_vm0, %v3291_v45, %v2881_v19  ;;  %v188_v39 = vsel %vm4642_vm0, %v3293_v46, %v2882_v24  ;;  %v3051_v16 = vld [vmem:[%s4637_s2 + $0x1a8] sm:$0xff]  }
  0x8f   :  { %v186_v40 = vsel %vm4642_vm0, %v3271_v34, %v2871_v22  ;;  %v506_v26 = vsel %vm4642_vm0, %v431_v17, %v2872_v20  ;;  %v2890_v38 = vpop.permute.xlu1 %2889  ;;  %v3546_v3 = vpack.c.bf16 %v188_v39, %v187_v28  ;;  %v3559_v17 = vld [vmem:[#allocation2 + $0x39] sm:$0xff] }
  0x90   :  { %v3500_v27 = vpack.c.bf16 %v186_v40, %v185_v11  ;;  %v2885_v29 = vpop.permute.xlu0 %2884  ;;  %v3502_v31 = vpack.c.bf16 %v507_v18, %v506_v26  ;;  %v522_v32 = vpack.c.bf16 %v506_v26, %v520_v23  ;;  %v203_v33 = vpack.c.bf16 %v187_v28, %v186_v40  ;;  %v3053_v20 = vld [vmem:[%s4637_s2 + $0x1e0] sm:$0xff]  }
  0x91   :  { %v2887_v43 = vunpack.i.h.bf16 %v2885_v29  ;;  %v2886_v36 = vunpack.i.l.bf16 %v2885_v29  ;;  %v2891_v41 = vunpack.i.l.bf16 %v2890_v38  ;;  %v2892_v4 = vunpack.i.h.bf16 %v2890_v38  ;;  %v3575_v26 = vld [vmem:[#allocation2 + $0x41] sm:$0xff] }
  0x92   :  { %375 = vmatmul.mubr.bf16.vlgmr.msra.gmra.mxu0 %v3500_v27  ;;  %696 = vmatprep.mubr.bf16.mxu1 %v522_v32  ;;  %v3054_v28 = vld [vmem:[%s4637_s2 + $0x120] sm:$0xff]  }
  0x93   :  { %382 = vmatprep.mubr.bf16.mxu0 %v203_v33  ;;  %697 = vmatmul.mubr.bf16.vlgmr.msra.gmra.mxu1 %v3502_v31  ;;  %v508_v54 = vsel %vm4642_vm0, %v3510_v42, %v2886_v36  ;;  %v189_v55 = vsel %vm4642_vm0, %v3300_v49, %v2891_v41  ;;  %v509_v57 = vsel %vm4642_vm0, %v3518_v53, %v2887_v43  ;;  %v3538_v63 = vpop.permute.xlu1 %2899  ;;  %v3055_v32 = vld [vmem:[%s4637_s2 + $0x1a0] sm:$0xff]   ;;  %v3056_v33 = vld [vmem:[%s4637_s2 + $0x158] sm:$0xff]  }
  0x94   :  { %2711 = vmatpush3.bf16.msra.mxu0 %v3042_v35  ;;  %2769 = vmatpush3.bf16.msra.mxu1 %v3043_v37  ;;  %v2895_v44 = vpop.permute.xlu0 %2894  ;;  %v524_v56 = vpack.c.bf16 %v508_v54, %v507_v18  ;;  %v205_v7 = vpack.c.bf16 %v189_v55, %v188_v39  ;;  %v3548_v8 = vpack.c.bf16 %v509_v57, %v508_v54  ;;  %v2901_v12 = vunpack.i.l.bf16 %v3538_v63  ;;  %v3052_v18 = vld [vmem:[%s4637_s2 + $0x160] sm:$0xff]   ;;  %v3057_v37 = vld [vmem:[%s4637_s2 + $0x1d8] sm:$0xff]  }
  0x95   :  { %v2896_v61 = vunpack.i.l.bf16 %v2895_v44  ;;  %2712 = vmatprep.subr.bf16.mxu0 %v3044_v48  ;;  %2770 = vmatprep.subr.bf16.mxu1 %v3045_v52  ;;  %v2897_v11 = vunpack.i.h.bf16 %v2895_v44  ;;  %v190_v23 = vsel %vm4642_vm0, %v3302_v50, %v2892_v4  ;;  %v2902_v38 = vunpack.i.h.bf16 %v3538_v63  ;;  %v3058_v39 = vld [vmem:[%s4637_s2 + $0x118] sm:$0xff]   ;;  %v3602_v44 = vld [vmem:[#allocation2 + $0x49] sm:$0xff] }
  0x96   :  { %704 = vmatprep.mubr.bf16.mxu1 %v524_v56  ;;  %v191_v24 = vsel %vm4642_vm0, %v3326_v59, %v2901_v12  ;;  %v3588_v35 = vpack.c.bf16 %v190_v23, %v189_v55  ;;  %v3059_v56 = vld [vmem:[%s4637_s2 + $0x198] sm:$0xff]   ;;  %v3061_v55 = vld [vmem:[%s4637_s2 + $0x1d0] sm:$0xff]  }
  0x97   :  { %v510_v10 = vsel %vm4642_vm0, %v3536_v58, %v2896_v61  ;;  %v511_v40 = vsel %vm4642_vm0, %v3559_v17, %v2897_v11  ;;  %v3580_v29 = vpop.permute.xlu1 %2909  ;;  %v207_v43 = vpack.c.bf16 %v191_v24, %v190_v23  ;;  %v192_v61 = vsel %vm4642_vm0, %v3328_v60, %v2902_v38  ;;  %v3062_v4 = vld [vmem:[%s4637_s2 + $0x110] sm:$0xff]   ;;  %v3064_v11 = vld [vmem:[%s4637_s2 + $0x148] sm:$0xff]  }
  0x98   :  { %2713 = vmatpush3.bf16.msra.mxu0 %v3046_v47  ;;  %2771 = vmatpush3.bf16.msra.mxu1 %v3047_v51  ;;  %v2905_v13 = vpop.permute.xlu0 %2904  ;;  %v526_v19 = vpack.c.bf16 %v510_v10, %v509_v57  ;;  %v3594_v36 = vpack.c.bf16 %v511_v40, %v510_v10  ;;  %v2911_v52 = vunpack.i.l.bf16 %v3580_v29  ;;  %v3060_v47 = vld [vmem:[%s4637_s2 + $0x150] sm:$0xff]   ;;  %v3632_v12 = vpack.c.bf16 %v192_v61, %v191_v24  ;;  %v3066_v24 = vld [vmem:[%s4637_s2 + $0x108] sm:$0xff]  }
  0x99   :  { %2714 = vmatprep.subr.bf16.mxu0 %v3048_v0  ;;  %2772 = vmatprep.subr.bf16.mxu1 %v3049_v2  ;;  %v2906_v22 = vunpack.i.l.bf16 %v2905_v13  ;;  %v2907_v48 = vunpack.i.h.bf16 %v2905_v13  ;;  %v3621_v2 = vld [vmem:[#allocation2 + $0x51] sm:$0xff]  ;;  %v3065_v13 = vld [vmem:[%s4637_s2 + $0x1c8] sm:$0xff]  }
  0x9a   :  { %383 = vmatmul.mubr.bf16.gmra.mxu0 %v3546_v3  ;;  %v193_v63 = vsel %vm4642_vm0, %v3349_v5, %v2911_v52  ;;  %v3063_v10 = vld [vmem:[%s4637_s2 + $0x190] sm:$0xff]   ;;  %v3070_v52 = vld [vmem:[%s4637_s2 + $0x100] sm:$0xff]  }
  0x9b   :  { %390 = vmatprep.mubr.bf16.mxu0 %v205_v7  ;;  %705 = vmatmul.mubr.bf16.gmra.mxu1 %v3548_v8  ;;  %v512_v41 = vsel %vm4642_vm0, %v3575_v26, %v2906_v22  ;;  %v513_v0 = vsel %vm4642_vm0, %v3602_v44, %v2907_v48  ;;  %v2920_v7 = vpop.permute.xlu1 %2919  ;;  %v3664_v48 = vld [vmem:[#allocation2 + $0x61] sm:$0xff] }
  0x9c   :  { %712 = vmatprep.mubr.bf16.mxu1 %v526_v19  ;;  %2715 = vmatpush3.bf16.msra.mxu0 %v3050_v14  ;;  %v2915_v54 = vpop.permute.xlu0 %2914  ;;  %v528_v51 = vpack.c.bf16 %v512_v41, %v511_v40  ;;  %v2912_v14 = vunpack.i.h.bf16 %v3580_v29  ;;  %v2921_v22 = vunpack.i.l.bf16 %v2920_v7  ;;  %v3645_v40 = vld [vmem:[#allocation2 + $0x59] sm:$0xff] }
  0x9d   :  { %2773 = vmatpush3.bf16.msra.mxu1 %v3051_v16  ;;  %2716 = vmatprep.subr.bf16.mxu0 %v3052_v18  ;;  %v2916_v57 = vunpack.i.l.bf16 %v2915_v54  ;;  %v209_v16 = vpack.c.bf16 %v193_v63, %v192_v61  ;;  %v3638_v18 = vpack.c.bf16 %v513_v0, %v512_v41  ;;  %v3068_v29 = vld [vmem:[%s4637_s2 + $0x140] sm:$0xff]  }
  0x9e   :  { %2774 = vmatprep.subr.bf16.mxu1 %v3053_v20  ;;  %v2917_v20 = vunpack.i.h.bf16 %v2915_v54  ;;  %v194_v38 = vsel %vm4642_vm0, %v3351_v6, %v2912_v14 }
  0x9f   :  { %v514_v19 = vsel %vm4642_vm0, %v3621_v2, %v2916_v57  ;;  %v2930_v54 = vpop.permute.xlu1 %2929 }
  0xa0   :  { %2717 = vmatpush3.bf16.msra.mxu0 %v3054_v28  ;;  %v2925_v23 = vpop.permute.xlu0 %2924  ;;  %v3067_v28 = vld [vmem:[%s4637_s2 + $0x188] sm:$0xff]   ;;  %v515_v41 = vsel %vm4642_vm0, %v3645_v40, %v2917_v20  ;;  %v2932_v20 = vunpack.i.h.bf16 %v2930_v54 }
  0xa1   :  { %2775 = vmatpush3.bf16.msra.mxu1 %v3055_v32  ;;  %2718 = vmatprep.subr.bf16.mxu0 %v3056_v33  ;;  %v530_v32 = vpack.c.bf16 %v514_v19, %v513_v0  ;;  %v3069_v33 = vld [vmem:[%s4637_s2 + $0x1c0] sm:$0xff]   ;;  %v2927_v61 = vunpack.i.h.bf16 %v2925_v23  ;;  %v2931_v0 = vunpack.i.l.bf16 %v2930_v54 }
  0xa2   :  { %391 = vmatmul.mubr.bf16.gmra.mxu0 %v3588_v35  ;;  %2776 = vmatprep.subr.bf16.mxu1 %v3057_v37  ;;  %v2926_v37 = vunpack.i.l.bf16 %v2925_v23 }
  0xa3   :  { %398 = vmatprep.mubr.bf16.mxu0 %v207_v43  ;;  %713 = vmatmul.mubr.bf16.gmra.mxu1 %v3594_v36  ;;  %v195_v43 = vsel %vm4642_vm0, %v3390_v21, %v2921_v22 }
  0xa4   :  { %720 = vmatprep.mubr.bf16.mxu1 %v528_v51  ;;  %2719 = vmatpush3.bf16.msra.mxu0 %v3058_v39  ;;  %v3071_v39 = vld [vmem:[%s4637_s2 + $0x180] sm:$0xff]   ;;  %v211_v51 = vpack.c.bf16 %v195_v43, %v194_v38  ;;  %v516_v57 = vsel %vm4642_vm0, %v3664_v48, %v2926_v37  ;;  %s3138_s2 = smov 32  }
  0xa5   :  { %2777 = vmatpush3.bf16.msra.mxu1 %v3059_v56  ;;  %2720 = vmatprep.subr.bf16.mxu0 %v3060_v47  ;;  %v3672_v56 = vpack.c.bf16 %v194_v38, %v193_v63  ;;  %v2922_v47 = vunpack.i.h.bf16 %v2920_v7  ;;  %v2940_v38 = vpop.permute.xlu1 %2939 }
  0xa6   :  { %2778 = vmatprep.subr.bf16.mxu1 %v3061_v55  ;;  %v3674_v55 = vpack.c.bf16 %v515_v41, %v514_v19  ;;  %v2942_v54 = vunpack.i.h.bf16 %v2940_v38 }
  0xa7   :  { %v196_v7 = vsel %vm4642_vm0, %v3375_v15, %v2922_v47 }
  0xa8   :  { %2721 = vmatpush3.bf16.msra.mxu0 %v3062_v4  ;;  %v2935_v4 = vpop.permute.xlu0 %2934  ;;  %v3690_v19 = vpack.c.bf16 %v196_v7, %v195_v43 }
  0xa9   :  { %2779 = vmatpush3.bf16.msra.mxu1 %v3063_v10  ;;  %2722 = vmatprep.subr.bf16.mxu0 %v3064_v11  ;;  %v3678_v10 = vld [vmem:[#allocation2 + $0x69] sm:$0xff]  ;;  %v532_v11 = vpack.c.bf16 %v516_v57, %v515_v41  ;;  %v2936_v63 = vunpack.i.l.bf16 %v2935_v4 }
  0xaa   :  { %399 = vmatmul.mubr.bf16.gmra.mxu0 %v3632_v12  ;;  %2780 = vmatprep.subr.bf16.mxu1 %v3065_v13  ;;  %v197_v13 = vsel %vm4642_vm0, %v3401_v25, %v2931_v0  ;;  %v517_v14 = vsel %vm4642_vm0, %v3678_v10, %v2927_v61 }
  0xab   :  { %406 = vmatprep.mubr.bf16.mxu0 %v209_v16  ;;  %721 = vmatmul.mubr.bf16.gmra.mxu1 %v3638_v18  ;;  %v3688_v16 = vld [vmem:[#allocation2 + $0x71] sm:$0xff]  ;;  %v213_v22 = vpack.c.bf16 %v197_v13, %v196_v7  ;;  %v3692_v23 = vpack.c.bf16 %v517_v14, %v516_v57  ;;  %v838_v57 = vsel %vm4642_vm0, %v3291_v45, %v2942_v54 }
  0xac   :  { %728 = vmatprep.mubr.bf16.mxu1 %v530_v32  ;;  %2723 = vmatpush3.bf16.msra.mxu0 %v3066_v24  ;;  %v518_v24 = vsel %vm4642_vm0, %v3688_v16, %v2936_v63  ;;  %v2945_v43 = vpop.permute.xlu0 %2944 }
  0xad   :  { %2781 = vmatpush3.bf16.msra.mxu1 %v3067_v28  ;;  %2724 = vmatprep.subr.bf16.mxu0 %v3068_v29  ;;  %v2937_v28 = vunpack.i.h.bf16 %v2935_v4  ;;  %v3696_v29 = vld [vmem:[#allocation2 + $0x79] sm:$0xff]  ;;  %v534_v32 = vpack.c.bf16 %v518_v24, %v517_v14  ;;  %v2947_v47 = vunpack.i.h.bf16 %v2945_v43 }
  0xae   :  { %2782 = vmatprep.subr.bf16.mxu1 %v3069_v33  ;;  %v198_v33 = vsel %vm4642_vm0, %v3412_v30, %v2932_v20 }
  0xaf   :  { %v519_v37 = vsel %vm4642_vm0, %v3696_v29, %v2937_v28  ;;  %v3704_v41 = vpack.c.bf16 %v198_v33, %v197_v13  ;;  %v1147_v0 = vsel %vm4642_vm0, %v3510_v42, %v2947_v47 }
  0xb0   :  { %2725 = vmatpush3.bf16.msra.mxu0 %v3070_v52  ;;  %v3706_v52 = vpack.c.bf16 %v519_v37, %v518_v24  ;;  %v2955_v63 = vpop.permute.xlu0 %2954 }
  0xb1   :  { %2783 = vmatpush3.bf16.msra.mxu1 %v3071_v39  ;;  %v2941_v39 = vunpack.i.l.bf16 %v2940_v38  ;;  %v2957_v20 = vunpack.i.h.bf16 %v2955_v63 }
  0xb2   :  { %407 = vmatmul.mubr.bf16.gmra.mxu0 %v3672_v56 }
  0xb3   :  { %414 = vmatprep.mubr.bf16.mxu0 %v211_v51  ;;  %729 = vmatmul.mubr.bf16.gmra.mxu1 %v3674_v55  ;;  %v2946_v51 = vunpack.i.l.bf16 %v2945_v43  ;;  %v837_v61 = vsel %vm4642_vm0, %v3271_v34, %v2941_v39 }
  0xb4   :  { %736 = vmatprep.mubr.bf16.mxu1 %v532_v11  ;;  %v2950_v11 = vpop.permute.xlu1 %2949  ;;  %v851_v7 = vpack.c.bf16 %v838_v57, %v837_v61  ;;  %v2965_v24 = vpop.permute.xlu0 %2964 }
  0xb5   :  { %v1146_v4 = vsel %vm4642_vm0, %v3486_v9, %v2946_v51  ;;  %v2952_v14 = vunpack.i.h.bf16 %v2950_v11  ;;  %v2967_v37 = vunpack.i.h.bf16 %v2965_v24  ;;  %v2966_v38 = vunpack.i.l.bf16 %v2965_v24 }
  0xb6   :  { %v1160_v13 = vpack.c.bf16 %v1147_v0, %v1146_v4 }
  0xb7   :  { %v840_v45 = vsel %vm4642_vm0, %v3300_v49, %v2952_v14 }
  0xb8   :  { %v2960_v42 = vpop.permute.xlu1 %2959  ;;  %v2975_v43 = vpop.permute.xlu0 %2974 }
  0xb9   :  { %v2961_v33 = vunpack.i.l.bf16 %v2960_v42  ;;  %v2977_v51 = vunpack.i.h.bf16 %v2975_v43  ;;  %v2976_v57 = vunpack.i.l.bf16 %v2975_v43 }
  0xba   :  { %415 = vmatmul.mubr.bf16.gmra.mxu0 %v3690_v19 }
  0xbb   :  { %422 = vmatprep.mubr.bf16.mxu0 %v213_v22  ;;  %737 = vmatmul.mubr.bf16.gmra.mxu1 %v3692_v23  ;;  %v2956_v22 = vunpack.i.l.bf16 %v2955_v63 }
  0xbc   :  { %744 = vmatprep.mubr.bf16.mxu1 %v534_v32  ;;  %v2985_v61 = vpop.permute.xlu0 %2984 }
  0xbd   :  { %v1148_v9 = vsel %vm4642_vm0, %v3518_v53, %v2956_v22  ;;  %v1150_v53 = vsel %vm4642_vm0, %v3559_v17, %v2966_v38  ;;  %v1152_v17 = vsel %vm4642_vm0, %v3602_v44, %v2976_v57  ;;  %v2987_v63 = vunpack.i.h.bf16 %v2985_v61 }
  0xc2   :  { %423 = vmatmul.mubr.bf16.gmra.mxu0 %v3704_v41 }
  0xc3   :  { %745 = vmatmul.mubr.bf16.gmra.mxu1 %v3706_v52  ;;  %1019 = vmatprep.mubr.bf16.mxu0 %v3500_v27  ;;  %v2951_v27 = vunpack.i.l.bf16 %v2950_v11 }
  0xc4   :  { %1328 = vmatprep.mubr.bf16.mxu1 %v3502_v31  ;;  %v1149_v31 = vsel %vm4642_vm0, %v3536_v58, %v2957_v20  ;;  %v1151_v58 = vsel %vm4642_vm0, %v3575_v26, %v2967_v37  ;;  %v1153_v26 = vsel %vm4642_vm0, %v3621_v2, %v2977_v51  ;;  %v1155_v2 = vsel %vm4642_vm0, %v3664_v48, %v2987_v63 }
  0xc5   :  { %v839_v34 = vsel %vm4642_vm0, %v3293_v46, %v2951_v27  ;;  %v1161_v32 = vpack.c.bf16 %v1149_v31, %v1148_v9  ;;  %v841_v46 = vsel %vm4642_vm0, %v3302_v50, %v2961_v33  ;;  %v1162_v39 = vpack.c.bf16 %v1151_v58, %v1150_v53 }
  0xc6   :  { %v852_v28 = vpack.c.bf16 %v840_v45, %v839_v34  ;;  %v1163_v4 = vpack.c.bf16 %v1153_v26, %v1152_v17 }
  0xca   :  { %1020 = vmatmul.mubr.bf16.vlgmr.msra.gmra.mxu0 %v851_v7  ;;  %v2986_v7 = vunpack.i.l.bf16 %v2985_v61 }
  0xcb   :  { %1027 = vmatprep.mubr.bf16.mxu0 %v3546_v3  ;;  %1329 = vmatmul.mubr.bf16.vlgmr.msra.gmra.mxu1 %v1160_v13  ;;  %v2962_v3 = vunpack.i.h.bf16 %v2960_v42  ;;  %v2995_v13 = vpop.permute.xlu0 %2994 }
  0xcc   :  { %1336 = vmatprep.mubr.bf16.mxu1 %v3548_v8  ;;  %v2970_v8 = vpop.permute.xlu1 %2969  ;;  %v1154_v44 = vsel %vm4642_vm0, %v3645_v40, %v2986_v7  ;;  %v2997_v22 = vunpack.i.h.bf16 %v2995_v13  ;;  %v2996_v34 = vunpack.i.l.bf16 %v2995_v13 }
  0xcd   :  { %v842_v49 = vsel %vm4642_vm0, %v3326_v59, %v2962_v3  ;;  %v2971_v47 = vunpack.i.l.bf16 %v2970_v8  ;;  %v1164_v27 = vpack.c.bf16 %v1155_v2, %v1154_v44 }
  0xce   :  { %v853_v54 = vpack.c.bf16 %v842_v49, %v841_v46  ;;  %v1156_v40 = vsel %vm4642_vm0, %v3678_v10, %v2996_v34  ;;  %v1157_v48 = vsel %vm4642_vm0, %v3688_v16, %v2997_v22 }
  0xcf   :  { %v843_v50 = vsel %vm4642_vm0, %v3328_v60, %v2971_v47  ;;  %v3005_v45 = vpop.permute.xlu0 %3004  ;;  %v1165_v31 = vpack.c.bf16 %v1157_v48, %v1156_v40 }
  0xd0   :  { %v3007_v24 = vunpack.i.h.bf16 %v3005_v45 }
  0xd2   :  { %1028 = vmatmul.mubr.bf16.gmra.mxu0 %v852_v28  ;;  %v3006_v28 = vunpack.i.l.bf16 %v3005_v45 }
  0xd3   :  { %1035 = vmatprep.mubr.bf16.mxu0 %v3588_v35  ;;  %1337 = vmatmul.mubr.bf16.gmra.mxu1 %v1161_v32  ;;  %v2972_v35 = vunpack.i.h.bf16 %v2970_v8 }
  0xd4   :  { %1344 = vmatprep.mubr.bf16.mxu1 %v3594_v36  ;;  %v2980_v36 = vpop.permute.xlu1 %2979  ;;  %v1158_v16 = vsel %vm4642_vm0, %v3696_v29, %v3006_v28 }
  0xd5   :  { %v844_v59 = vsel %vm4642_vm0, %v3349_v5, %v2972_v35  ;;  %v2981_v11 = vunpack.i.l.bf16 %v2980_v36 }
  0xd6   :  { %v854_v0 = vpack.c.bf16 %v844_v59, %v843_v50 }
  0xd7   :  { %v845_v60 = vsel %vm4642_vm0, %v3351_v6, %v2981_v11 }
  0xda   :  { %1036 = vmatmul.mubr.bf16.gmra.mxu0 %v853_v54 }
  0xdb   :  { %1043 = vmatprep.mubr.bf16.mxu0 %v3632_v12  ;;  %1345 = vmatmul.mubr.bf16.gmra.mxu1 %v1162_v39  ;;  %v2982_v12 = vunpack.i.h.bf16 %v2980_v36 }
  0xdc   :  { %1352 = vmatprep.mubr.bf16.mxu1 %v3638_v18  ;;  %v2990_v18 = vpop.permute.xlu1 %2989 }
  0xdd   :  { %v846_v5 = vsel %vm4642_vm0, %v3390_v21, %v2982_v12  ;;  %v2991_v20 = vunpack.i.l.bf16 %v2990_v18 }
  0xde   :  { %v855_v14 = vpack.c.bf16 %v846_v5, %v845_v60 }
  0xdf   :  { %v847_v6 = vsel %vm4642_vm0, %v3375_v15, %v2991_v20  ;;  %v1089_v15 = vld [vmem:[#allocation2 + $0x81] sm:$0xff] }
  0xe2   :  { %1044 = vmatmul.mubr.bf16.gmra.mxu0 %v854_v0 }
  0xe3   :  { %1051 = vmatprep.mubr.bf16.mxu0 %v3672_v56  ;;  %1353 = vmatmul.mubr.bf16.gmra.mxu1 %v1163_v4  ;;  %v2992_v56 = vunpack.i.h.bf16 %v2990_v18 }
  0xe4   :  { %1360 = vmatprep.mubr.bf16.mxu1 %v3674_v55  ;;  %v3000_v55 = vpop.permute.xlu1 %2999 }
  0xe5   :  { %v848_v21 = vsel %vm4642_vm0, %v3401_v25, %v2992_v56  ;;  %v3001_v42 = vunpack.i.l.bf16 %v3000_v55 }
  0xe6   :  { %v856_v9 = vpack.c.bf16 %v848_v21, %v847_v6 }
  0xe7   :  { %v849_v25 = vsel %vm4642_vm0, %v3412_v30, %v3001_v42 }
  0xea   :  { %1052 = vmatmul.mubr.bf16.gmra.mxu0 %v855_v14 }
  0xeb   :  { %1059 = vmatprep.mubr.bf16.mxu0 %v3690_v19  ;;  %1361 = vmatmul.mubr.bf16.gmra.mxu1 %v1164_v27  ;;  %v3002_v19 = vunpack.i.h.bf16 %v3000_v55 }
  0xec   :  { %1368 = vmatprep.mubr.bf16.mxu1 %v3692_v23  ;;  %v1159_v23 = vsel %vm4642_vm0, %v1089_v15, %v3007_v24 }
  0xed   :  { %v850_v10 = vsel %vm4642_vm0, %v3479_v62, %v3002_v19  ;;  %v1166_v3 = vpack.c.bf16 %v1159_v23, %v1158_v16 }
  0xee   :  { %v857_v32 = vpack.c.bf16 %v850_v10, %v849_v25 }
  0xf2   :  { %1060 = vmatmul.mubr.bf16.gmra.mxu0 %v856_v9 }
  0xf3   :  { %1067 = vmatprep.mubr.bf16.mxu0 %v3704_v41  ;;  %1369 = vmatmul.mubr.bf16.gmra.mxu1 %v1165_v31 }
  0xf4   :  { %1376 = vmatprep.mubr.bf16.mxu1 %v3706_v52 }
  0xfa   :  { %1068 = vmatmul.mubr.bf16.gmra.mxu0 %v857_v32 }
  0xfb   :  { %1377 = vmatmul.mubr.bf16.gmra.mxu1 %v1166_v3 }
 0x152   :  { %v2610_v33 = vpop.f32.mrf.mxu0 }
 0x153   :  { %v2668_v41 = vpop.f32.mrf.mxu1 }
 0x154   :  { %v2611_v37 = vpop.f32.mrf.mxu0 }
 0x155   :  { %v3779_v38 = vadd.f32 %v2611_v37, %v2610_v33  ;;  %v2669_v30 = vpop.f32.mrf.mxu1 }
 0x156   :  { %v2670_v46 = vadd.f32 %v2669_v30, %v2668_v41  ;;  %v2613_v49 = vpop.f32.mrf.mxu0 }
 0x157   :  { %v2671_v62 = vpop.f32.mrf.mxu1 }
 0x158   :  { %1399 = vrot.lane.b32.xlu1 %v2670_v46, %s3138_s2  ;;  %v2614_v52 = vpop.f32.mrf.mxu0 }
 0x159   :  { %v3782_v29 = vadd.f32 %v2614_v52, %v2613_v49  ;;  %v2672_v53 = vpop.f32.mrf.mxu1 }
 0x15a   :  { %v2673_v58 = vadd.f32 %v2672_v53, %v2671_v62  ;;  %v2616_v8 = vpop.f32.mrf.mxu0 }
 0x15b   :  { %v2674_v43 = vpop.f32.mrf.mxu1 }
 0x15c   :  { %1401 = vrot.lane.b32.xlu0 %v2673_v58, %s3138_s2  ;;  %v2617_v54 = vpop.f32.mrf.mxu0 }
 0x15d   :  { %v3785_v39 = vadd.f32 %v2617_v54, %v2616_v8  ;;  %v2675_v35 = vpop.f32.mrf.mxu1 }
 0x15e   :  { %v2676_v47 = vadd.f32 %v2675_v35, %v2674_v43  ;;  %v2619_v51 = vpop.f32.mrf.mxu0 }
 0x15f   :  { %v2677_v57 = vpop.f32.mrf.mxu1 }
 0x160   :  { %1403 = vrot.lane.b32.xlu1 %v2676_v47, %s3138_s2  ;;  %v2620_v50 = vpop.f32.mrf.mxu0 }
 0x161   :  { %v3788_v59 = vadd.f32 %v2620_v50, %v2619_v51  ;;  %v2678_v17 = vpop.f32.mrf.mxu1 }
 0x162   :  { %v2679_v26 = vadd.f32 %v2678_v17, %v2677_v57  ;;  %v2622_v36 = vpop.f32.mrf.mxu0 }
 0x163   :  { %v2680_v61 = vpop.f32.mrf.mxu1 }
 0x164   :  { %1405 = vrot.lane.b32.xlu1 %v2679_v26, %s3138_s2  ;;  %v2623_v0 = vpop.f32.mrf.mxu0 }
 0x165   :  { %v3791_v4 = vadd.f32 %v2623_v0, %v2622_v36  ;;  %v2681_v12 = vpop.f32.mrf.mxu1 }
 0x166   :  { %v2682_v11 = vadd.f32 %v2681_v12, %v2680_v61  ;;  %v2625_v63 = vpop.f32.mrf.mxu0 }
 0x167   :  { %v2683_v7 = vpop.f32.mrf.mxu1 }
 0x168   :  { %1407 = vrot.lane.b32.xlu0 %v2682_v11, %s3138_s2  ;;  %v2626_v60 = vpop.f32.mrf.mxu0 }
 0x169   :  { %v3794_v5 = vadd.f32 %v2626_v60, %v2625_v63  ;;  %v2684_v44 = vpop.f32.mrf.mxu1 }
 0x16a   :  { %v2685_v2 = vadd.f32 %v2684_v44, %v2683_v7  ;;  %v2628_v18 = vpop.f32.mrf.mxu0 }
 0x16b   :  { %v2686_v13 = vpop.f32.mrf.mxu1 }
 0x16c   :  { %1409 = vrot.lane.b32.xlu1 %v2685_v2, %s3138_s2  ;;  %v2629_v14 = vpop.f32.mrf.mxu0 }
 0x16d   :  { %v3797_v27 = vadd.f32 %v2629_v14, %v2628_v18  ;;  %v2687_v56 = vpop.f32.mrf.mxu1 }
 0x16e   :  { %v2688_v20 = vadd.f32 %v2687_v56, %v2686_v13  ;;  %v2631_v22 = vpop.f32.mrf.mxu0 }
 0x16f   :  { %v2689_v34 = vpop.f32.mrf.mxu1 }
 0x170   :  { %1411 = vrot.lane.b32.xlu0 %v2688_v20, %s3138_s2  ;;  %v2632_v6 = vpop.f32.mrf.mxu0 }
 0x171   :  { %v3800_v21 = vadd.f32 %v2632_v6, %v2631_v22  ;;  %v2690_v40 = vpop.f32.mrf.mxu1 }
 0x172   :  { %v2691_v48 = vadd.f32 %v2690_v40, %v2689_v34  ;;  %v2634_v55 = vpop.f32.mrf.mxu0 }
 0x173   :  { %v2692_v45 = vpop.f32.mrf.mxu1 }
 0x174   :  { %1413 = vrot.lane.b32.xlu1 %v2691_v48, %s3138_s2  ;;  %v2635_v9 = vpop.f32.mrf.mxu0 }
 0x175   :  { %v3803_v31 = vadd.f32 %v2635_v9, %v2634_v55  ;;  %v2693_v19 = vpop.f32.mrf.mxu1 }
 0x176   :  { %v2694_v42 = vadd.f32 %v2693_v19, %v2692_v45  ;;  %v2637_v24 = vpop.f32.mrf.mxu0 }
 0x177   :  { %v2695_v28 = vpop.f32.mrf.mxu1 }
 0x178   :  { %1415 = vrot.lane.b32.xlu0 %v2694_v42, %s3138_s2  ;;  %v2638_v15 = vpop.f32.mrf.mxu0 }
 0x179   :  { %v3806_v25 = vadd.f32 %v2638_v15, %v2637_v24  ;;  %v2696_v10 = vpop.f32.mrf.mxu1 }
 0x17a   :  { %v2697_v16 = vadd.f32 %v2696_v10, %v2695_v28  ;;  %v2640_v23 = vpop.f32.mrf.mxu0 }
 0x17b   :  { %v2698_v32 = vpop.f32.mrf.mxu1 }
 0x17c   :  { %1417 = vrot.lane.b32.xlu1 %v2697_v16, %s3138_s2  ;;  %v2641_v3 = vpop.f32.mrf.mxu0 }
 0x17d   :  { %v3809_v33 = vadd.f32 %v2641_v3, %v2640_v23  ;;  %v2699_v41 = vpop.f32.mrf.mxu1 }
 0x17e   :  { %v2700_v37 = vadd.f32 %v2699_v41, %v2698_v32  ;;  %v2643_v30 = vpop.f32.mrf.mxu0  ;;  %v1617_v32 = vlaneseq }
 0x17f   :  { %v2701_v46 = vpop.f32.mrf.mxu1 }
 0x180   :  { %1419 = vrot.lane.b32.xlu0 %v2700_v37, %s3138_s2  ;;  %v2644_v49 = vpop.f32.mrf.mxu0 }
 0x181   :  { %v3812_v62 = vadd.f32 %v2644_v49, %v2643_v30  ;;  %v2702_v52 = vpop.f32.mrf.mxu1 }
 0x182   :  { %v2703_v53 = vadd.f32 %v2702_v52, %v2701_v46  ;;  %v2646_v58 = vpop.f32.mrf.mxu0  ;;  %v3830_v52 = vshrl.u32 %v1617_v32, 7 }
 0x183   :  { %v2704_v8 = vpop.f32.mrf.mxu1 }
 0x184   :  { %1421 = vrot.lane.b32.xlu1 %v2703_v53, %s3138_s2  ;;  %v2647_v43 = vpop.f32.mrf.mxu0 }
 0x185   :  { %v3815_v54 = vadd.f32 %v2647_v43, %v2646_v58  ;;  %v2705_v35 = vpop.f32.mrf.mxu1 }
 0x186   :  { %v2706_v47 = vadd.f32 %v2705_v35, %v2704_v8  ;;  %v2649_v51 = vpop.f32.mrf.mxu0  ;;  %v3835_v8 = vadd.s32 8, %v3830_v52 }
 0x187   :  { %v2707_v57 = vpop.f32.mrf.mxu1 }
 0x188   :  { %1423 = vrot.lane.b32.xlu0 %v2706_v47, %s3138_s2  ;;  %v2650_v50 = vpop.f32.mrf.mxu0 }
 0x189   :  { %v3818_v17 = vadd.f32 %v2650_v50, %v2649_v51  ;;  %v2708_v26 = vpop.f32.mrf.mxu1 }
 0x18a   :  { %v2709_v36 = vadd.f32 %v2708_v26, %v2707_v57  ;;  %v2726_v61 = vpop.f32.mrf.mxu0  ;;  %v3839_v50 = vmul.u32.u64.low 2454267026, %v3830_v52  ;;  %v3840_v26 = vmul.u32.u64.high 2454267026, %v3830_v52, %v3839_v50 }
 0x18b   :  { %4645 = vst [vmem:[#allocation10_spill] sm:$0xff] %v3818_v17  ;;  %v2784_v0 = vpop.f32.mrf.mxu1 }
 0x18c   :  { %1425 = vrot.lane.b32.xlu1 %v2709_v36, %s3138_s2  ;;  %v2727_v12 = vpop.f32.mrf.mxu0  ;;  %vm1638_vm3 = vc.u32 %v3839_v50, 2454267026 }
 0x18d   :  { %v2728_v11 = vadd.f32 %v2727_v12, %v2726_v61  ;;  %v2785_v63 = vpop.f32.mrf.mxu1 }
 0x18e   :  { %v2786_v7 = vadd.f32 %v2785_v63, %v2784_v0  ;;  %v2729_v60 = vpop.f32.mrf.mxu0  ;;  %v3844_v61 = vmul.u32.u64.low 2454267026, %v3835_v8  ;;  %v3845_v0 = vmul.u32.u64.high 2454267026, %v3835_v8, %v3844_v61 }
 0x18f   :  { %v2787_v44 = vpop.f32.mrf.mxu1 }
 0x190   :  { %1511 = vrot.lane.b32.xlu0 %v2786_v7, %s3139_s12  ;;  %v2730_v2 = vpop.f32.mrf.mxu0  ;;  %1455 = vrot.lane.b32.xlu1 %v2728_v11, %s3137_s25  ;;  %vm1652_vm4 = vc.u32 %v3844_v61, 2454267026 }
 0x191   :  { %v2731_v18 = vadd.f32 %v2730_v2, %v2729_v60  ;;  %v2788_v13 = vpop.f32.mrf.mxu1  ;;  %v3850_v2 = vadd.s32 16, %v3830_v52 }
 0x192   :  { %v2789_v14 = vadd.f32 %v2788_v13, %v2787_v44  ;;  %v2732_v56 = vpop.f32.mrf.mxu0 }
 0x193   :  { %v2790_v20 = vpop.f32.mrf.mxu1 }
 0x194   :  { %v2733_v22 = vpop.f32.mrf.mxu0  ;;  %1457 = vrot.lane.b32.xlu0 %v2731_v18, %s3137_s25  ;;  %1513 = vrot.lane.b32.xlu1 %v2789_v14, %s3139_s12  ;;  %v3853_v18 = vadd.s32 24, %v3830_v52 }
 0x195   :  { %v2734_v34 = vadd.f32 %v2733_v22, %v2732_v56  ;;  %v2791_v6 = vpop.f32.mrf.mxu1  ;;  %v3140_v22 = vmov 0  }
 0x196   :  { %v2735_v40 = vpop.f32.mrf.mxu0  ;;  %v2792_v19 = vadd.f32 %v2791_v6, %v2790_v20 }
 0x197   :  { %v2793_v48 = vpop.f32.mrf.mxu1 }
 0x198   :  { %v2736_v55 = vpop.f32.mrf.mxu0  ;;  %1459 = vrot.lane.b32.xlu0 %v2734_v34, %s3137_s25  ;;  %v1639_v34 = vsel %vm1638_vm3, 1, %v3140_v22 }
 0x199   :  { %v2737_v45 = vadd.f32 %v2736_v55, %v2735_v40  ;;  %v2794_v9 = vpop.f32.mrf.mxu1  ;;  %v1653_v40 = vsel %vm1652_vm4, 1, %v3140_v22 }
 0x19a   :  { %v2738_v42 = vpop.f32.mrf.mxu0  ;;  %v2795_v15 = vadd.f32 %v2794_v9, %v2793_v48 }
 0x19b   :  { %v2796_v24 = vpop.f32.mrf.mxu1  ;;  %1461 = vrot.lane.b32.xlu1 %v2737_v45, %s3137_s25  ;;  %v3860_v55 = vmul.u32.u64.low 2454267026, %v3850_v2  ;;  %v3861_v45 = vmul.u32.u64.high 2454267026, %v3850_v2, %v3860_v55 }
 0x19c   :  { %v2739_v28 = vpop.f32.mrf.mxu0  ;;  %1515 = vrot.lane.b32.xlu0 %v2792_v19, %s3139_s12  ;;  %v3864_v9 = vmul.u32.u64.low 2454267026, %v3853_v18  ;;  %v3865_v19 = vmul.u32.u64.high 2454267026, %v3853_v18, %v3864_v9 }
 0x19d   :  { %v2740_v10 = vadd.f32 %v2739_v28, %v2738_v42  ;;  %v2797_v16 = vpop.f32.mrf.mxu1  ;;  %v1640_v28 = vadd.s32 %v3840_v26, %v1639_v34  ;;  %vm1666_vm5 = vc.u32 %v3860_v55, 2454267026 }
 0x19e   :  { %v2741_v23 = vpop.f32.mrf.mxu0  ;;  %v2798_v46 = vadd.f32 %v2797_v16, %v2796_v24  ;;  %v1654_v16 = vadd.s32 %v3845_v0, %v1653_v40  ;;  %vm1680_vm6 = vc.u32 %v3864_v9, 2454267026 }
 0x19f   :  { %v2799_v3 = vpop.f32.mrf.mxu1  ;;  %1517 = vrot.lane.b32.xlu1 %v2795_v15, %s3139_s12 }
 0x1a0   :  { %v2742_v41 = vpop.f32.mrf.mxu0  ;;  %1463 = vrot.lane.b32.xlu0 %v2740_v10, %s3137_s25 }
 0x1a1   :  { %v2743_v37 = vadd.f32 %v2742_v41, %v2741_v23  ;;  %v2800_v30 = vpop.f32.mrf.mxu1 }
 0x1a2   :  { %v2744_v49 = vpop.f32.mrf.mxu0  ;;  %v2801_v43 = vadd.f32 %v2800_v30, %v2799_v3  ;;  %v1641_v30 = vshrl.u32 %v1640_v28, 5 }
 0x1a3   :  { %v2802_v53 = vpop.f32.mrf.mxu1  ;;  %1465 = vrot.lane.b32.xlu1 %v2743_v37, %s3137_s25 }
 0x1a4   :  { %v2745_v58 = vpop.f32.mrf.mxu0  ;;  %1519 = vrot.lane.b32.xlu0 %v2798_v46, %s3139_s12  ;;  %v1642_v26 = vmul.u32 56, %v1641_v30 }
 0x1a5   :  { %v2746_v35 = vadd.f32 %v2745_v58, %v2744_v49  ;;  %v2803_v47 = vpop.f32.mrf.mxu1  ;;  %v1655_v49 = vshrl.u32 %v1654_v16, 5  ;;  %v1667_v58 = vsel %vm1666_vm5, 1, %v3140_v22 }
 0x1a6   :  { %v2747_v51 = vpop.f32.mrf.mxu0  ;;  %v2804_v63 = vadd.f32 %v2803_v47, %v2802_v53  ;;  %v3878_v47 = vadd.s32 40, %v3830_v52 }
 0x1a7   :  { %v2805_v57 = vpop.f32.mrf.mxu1  ;;  %1521 = vrot.lane.b32.xlu1 %v2801_v43, %s3139_s12  ;;  %v1681_v43 = vsel %vm1680_vm6, 1, %v3140_v22  ;;  %v1656_v0 = vmul.u32 56, %v1655_v49 }
 0x1a8   :  { %v2748_v36 = vpop.f32.mrf.mxu0  ;;  %1467 = vrot.lane.b32.xlu0 %v2746_v35, %s3137_s25  ;;  %v3875_v35 = vadd.s32 32, %v3830_v52 }
 0x1a9   :  { %v2749_v12 = vadd.f32 %v2748_v36, %v2747_v51  ;;  %v2806_v11 = vpop.f32.mrf.mxu1 }
 0x1aa   :  { %v2750_v7 = vpop.f32.mrf.mxu0  ;;  %v2807_v13 = vadd.f32 %v2806_v11, %v2805_v57  ;;  %v1682_v11 = vadd.s32 %v3865_v19, %v1681_v43 }
 0x1ab   :  { %v2808_v60 = vpop.f32.mrf.mxu1  ;;  %1469 = vrot.lane.b32.xlu1 %v2749_v12, %s3137_s25  ;;  %v1668_v12 = vadd.s32 %v3861_v45, %v1667_v58  ;;  %v1657_v45 = vsub.s32 %v3835_v8, %v1656_v0 }
 0x1ac   :  { %v2751_v44 = vpop.f32.mrf.mxu0  ;;  %1523 = vrot.lane.b32.xlu0 %v2804_v63, %s3139_s12  ;;  %v1683_v9 = vshrl.u32 %v1682_v11, 5 }
 0x1ad   :  { %v2752_v14 = vadd.f32 %v2751_v44, %v2750_v7  ;;  %v2809_v56 = vpop.f32.mrf.mxu1  ;;  %vm1829_vm11 = vcmp.ne.s32.totalorder %v1657_v45, 0  ;;  %vm1843_vm12 = vcmp.lt.s32.totalorder %v1657_v45, 0 }
 0x1ae   :  { %v2753_v20 = vpop.f32.mrf.mxu0  ;;  %v2810_v15 = vadd.f32 %v2809_v56, %v2808_v60  ;;  %v3885_v7 = vmul.u32.u64.low 2454267026, %v3875_v35  ;;  %v3886_v60 = vmul.u32.u64.high 2454267026, %v3875_v35, %v3885_v7  ;;  %v1684_v8 = vmul.u32 56, %v1683_v9  ;;  %vm1857_vm14 = vmand %vm1843_vm12, %vm1829_vm11 }
 0x1af   :  { %v2811_v6 = vpop.f32.mrf.mxu1  ;;  %1525 = vrot.lane.b32.xlu1 %v2807_v13, %s3139_s12  ;;  %v3889_v44 = vmul.u32.u64.low 2454267026, %v3878_v47  ;;  %v3890_v13 = vmul.u32.u64.high 2454267026, %v3878_v47, %v3889_v44 }
 0x1b0   :  { %v2754_v48 = vpop.f32.mrf.mxu0  ;;  %1471 = vrot.lane.b32.xlu0 %v2752_v14, %s3137_s25  ;;  %vm1694_vm7 = vc.u32 %v3885_v7, 2454267026 }
 0x1b1   :  { %v2755_v42 = vadd.f32 %v2754_v48, %v2753_v20  ;;  %v2812_v24 = vpop.f32.mrf.mxu1  ;;  %v1669_v48 = vshrl.u32 %v1668_v12, 5  ;;  %vm1708_vm8 = vc.u32 %v3889_v44, 2454267026 }
 0x1b2   :  { %v2756_v10 = vpop.f32.mrf.mxu0  ;;  %v2813_v3 = vadd.f32 %v2812_v24, %v2811_v6  ;;  %v1643_v6 = vsub.s32 %v3830_v52, %v1642_v26 }
 0x1b3   :  { %v2814_v23 = vpop.f32.mrf.mxu1  ;;  %1473 = vrot.lane.b32.xlu1 %v2755_v42, %s3137_s25  ;;  %v1670_v28 = vmul.u32 56, %v1669_v48 }
 0x1b4   :  { %v2757_v32 = vpop.f32.mrf.mxu0  ;;  %1527 = vrot.lane.b32.xlu0 %v2810_v15, %s3139_s12  ;;  %vm1828_vm9 = vcmp.ne.s32.totalorder %v1643_v6, 0  ;;  %vm1842_vm10 = vcmp.lt.s32.totalorder %v1643_v6, 0  ;;  %v1695_v15 = vsel %vm1694_vm7, 1, %v3140_v22 }
 0x1b5   :  { %v2758_v41 = vadd.f32 %v2757_v32, %v2756_v10  ;;  %v2815_v37 = vpop.f32.mrf.mxu1  ;;  %v1709_v10 = vsel %vm1708_vm8, 1, %v3140_v22  ;;  %vm1856_vm13 = vmand %vm1842_vm10, %vm1828_vm9  ;;  %v1871_v32 = vadd.s32 56, %v1657_v45  ;;  %v1671_v30 = vsub.s32 %v3850_v2, %v1670_v28 }
 0x1b6   :  { %v2759_v46 = vpop.f32.mrf.mxu0  ;;  %v2816_v36 = vadd.f32 %v2815_v37, %v2814_v23  ;;  %v1870_v23 = vadd.s32 56, %v1643_v6  ;;  %v3916_v2 = vadd.s32 56, %v3830_v52 }
 0x1b7   :  { %v2817_v53 = vpop.f32.mrf.mxu1  ;;  %1529 = vrot.lane.b32.xlu1 %v2813_v3, %s3139_s12  ;;  %v1696_v3 = vadd.s32 %v3886_v60, %v1695_v15  ;;  %v3912_v58 = vsel %vm1857_vm14, %v1871_v32, %v1657_v45  ;;  %vm1830_vm15 = vcmp.ne.s32.totalorder %v1671_v30, 0  ;;  %vm1844_vm1 = vcmp.lt.s32.totalorder %v1671_v30, 0 }
 0x1b8   :  { %v2760_v51 = vpop.f32.mrf.mxu0  ;;  %1475 = vrot.lane.b32.xlu0 %v2758_v41, %s3137_s25  ;;  %v1710_v41 = vadd.s32 %v3890_v13, %v1709_v10  ;;  %v3907_v49 = vsel %vm1856_vm13, %v1870_v23, %v1643_v6  ;;  %vm1858_vm4 = vmand %vm1844_vm1, %vm1830_vm15  ;;  %vm1919_vm14 = vcmp.lt.s32.totalorder %v3912_v58, 0 }
 0x1b9   :  { %v2761_v57 = vadd.f32 %v2760_v51, %v2759_v46  ;;  %v2818_v50 = vpop.f32.mrf.mxu1  ;;  %v1685_v46 = vsub.s32 %v3853_v18, %v1684_v8  ;;  %v1697_v43 = vshrl.u32 %v1696_v3, 5  ;;  %v1920_v18 = vsub.s32 0, %v3912_v58 }
 0x1ba   :  { %v2762_v61 = vpop.f32.mrf.mxu0  ;;  %v2819_v56 = vadd.f32 %v2818_v50, %v2817_v53  ;;  %v3910_v53 = vadd.s32 48, %v3830_v52  ;;  %v1711_v51 = vshrl.u32 %v1710_v41, 5  ;;  %vm1912_vm12 = vcmp.lt.s32.totalorder %v3907_v49, 0 }
 0x1bb   :  { %v2820_v63 = vpop.f32.mrf.mxu1  ;;  %1477 = vrot.lane.b32.xlu1 %v2761_v57, %s3137_s25  ;;  %v1913_v57 = vsub.s32 0, %v3907_v49  ;;  %vm1831_vm2 = vcmp.ne.s32.totalorder %v1685_v46, 0  ;;  %vm1845_vm3 = vcmp.lt.s32.totalorder %v1685_v46, 0  ;;  %v1698_v0 = vmul.u32 56, %v1697_v43 }
 0x1bc   :  { %v2763_v14 = vpop.f32.mrf.mxu0  ;;  %1531 = vrot.lane.b32.xlu0 %v2816_v36, %s3139_s12  ;;  %v3920_v50 = vmul.u32.u64.low 2454267026, %v3910_v53  ;;  %v3921_v26 = vmul.u32.u64.high 2454267026, %v3910_v53, %v3920_v50  ;;  %v1872_v36 = vadd.s32 56, %v1671_v30  ;;  %v1712_v12 = vmul.u32 56, %v1711_v51  ;;  %vm1859_vm5 = vmand %vm1845_vm3, %vm1831_vm2 }
 0x1bd   :  { %v2764_v20 = vadd.f32 %v2763_v14, %v2762_v61  ;;  %v2821_v34 = vpop.f32.mrf.mxu1  ;;  %v1873_v61 = vadd.s32 56, %v1685_v46  ;;  %v2488_v11 = vmin.u32 %v1913_v57, %v3907_v49  ;;  %v2489_v60 = vmin.u32 %v1920_v18, %v3912_v58 }
 0x1be   :  { %v2765_v40 = vpop.f32.mrf.mxu0  ;;  %v2822_v24 = vadd.f32 %v2821_v34, %v2820_v63  ;;  %v3925_v63 = vmul.u32.u64.low 2454267026, %v3916_v2  ;;  %v3926_v7 = vmul.u32.u64.high 2454267026, %v3916_v2, %v3925_v63  ;;  %vm1722_vm6 = vc.u32 %v3920_v50, 2454267026 }
 0x1bf   :  { %v2823_v55 = vpop.f32.mrf.mxu1  ;;  %1533 = vrot.lane.b32.xlu1 %v2819_v56, %s3139_s12  ;;  %v3929_v44 = vsel %vm1858_vm4, %v1872_v36, %v1671_v30  ;;  %v3931_v13 = vsel %vm1859_vm5, %v1873_v61, %v1685_v46  ;;  %v1699_v14 = vsub.s32 %v3875_v35, %v1698_v0  ;;  %v1713_v56 = vsub.s32 %v3878_v47, %v1712_v12 }
 0x1c0   :  { %v2766_v19 = vpop.f32.mrf.mxu0  ;;  %1479 = vrot.lane.b32.xlu0 %v2764_v20, %s3137_s25  ;;  %v3936_v20 = vadd.s32 64, %v3830_v52  ;;  %v1916_v34 = vand.u32 7, %v2488_v11  ;;  %v1723_v6 = vsel %vm1722_vm6, 1, %v3140_v22  ;;  %vm1736_vm7 = vc.u32 %v3925_v63, 2454267026 }
 0x1c1   :  { %v2767_v42 = vadd.f32 %v2766_v19, %v2765_v40  ;;  %v2824_v16 = vpop.f32.mrf.mxu1  ;;  %v1923_v40 = vand.u32 7, %v2489_v60  ;;  %v1927_v48 = vsub.s32 0, %v3929_v44  ;;  %vm1832_vm8 = vcmp.ne.s32.totalorder %v1699_v14, 0 }
 0x1c2   :  { %v2825_v37 = vadd.f32 %v2824_v16, %v2823_v55  ;;  %v1934_v55 = vsub.s32 0, %v3931_v13  ;;  %vm1846_vm9 = vcmp.lt.s32.totalorder %v1699_v14, 0  ;;  %vm1833_vm10 = vcmp.ne.s32.totalorder %v1713_v56, 0 }
 0x1c3   :  { %1481 = vrot.lane.b32.xlu1 %v2767_v42, %s3137_s25  ;;  %vm1847_vm11 = vcmp.lt.s32.totalorder %v1713_v56, 0  ;;  %v1724_v35 = vadd.s32 %v3921_v26, %v1723_v6  ;;  %v1737_v47 = vsel %vm1736_vm7, 1, %v3140_v22  ;;  %v1917_v19 = vsub.s32 0, %v1916_v34  ;;  %vm1860_vm13 = vmand %vm1846_vm9, %vm1832_vm8 }
 0x1c4   :  { %1535 = vrot.lane.b32.xlu0 %v2822_v24, %s3139_s12  ;;  %v3944_v45 = vmul.u32.u64.low 2454267026, %v3936_v20  ;;  %v3945_v9 = vmul.u32.u64.high 2454267026, %v3936_v20, %v3944_v45  ;;  %v3948_v42 = vadd.s32 72, %v3830_v52  ;;  %v1924_v24 = vsub.s32 0, %v1923_v40  ;;  %vm1861_vm15 = vmand %vm1847_vm11, %vm1833_vm10 }
 0x1c5   :  { %v1874_v28 = vadd.s32 56, %v1699_v14  ;;  %v1875_v15 = vadd.s32 56, %v1713_v56  ;;  %v2490_v10 = vmin.u32 %v1927_v48, %v3929_v44  ;;  %v2491_v16 = vmin.u32 %v1934_v55, %v3931_v13 }
 0x1c6   :  { %v1738_v8 = vadd.s32 %v3926_v7, %v1737_v47  ;;  %v1725_v23 = vshrl.u32 %v1724_v35, 5  ;;  %vm1750_vm1 = vc.u32 %v3944_v45, 2454267026  ;;  %v3961_v41 = vsel %vm1912_vm12, %v1917_v19, %v1916_v34 }
 0x1c7   :  { %v3958_v32 = vmul.u32.u64.low 2454267026, %v3948_v42  ;;  %v3959_v3 = vmul.u32.u64.high 2454267026, %v3948_v42, %v3958_v32  ;;  %v3965_v30 = vsel %vm1860_vm13, %v1874_v28, %v1699_v14  ;;  %v3967_v46 = vsel %vm1861_vm15, %v1875_v15, %v1713_v56 }
 0x1c8   :  { %1537 = vrot.lane.b32.xlu0 %v2825_v37, %s3139_s12  ;;  %v3963_v37 = vsel %vm1919_vm14, %v1924_v24, %v1923_v40  ;;  %v1930_v43 = vand.u32 7, %v2490_v10  ;;  %v1937_v51 = vand.u32 7, %v2491_v16  ;;  %v1739_v57 = vshrl.u32 %v1738_v8, 5 }
 0x1c9   :  { %v1751_v18 = vsel %vm1750_vm1, 1, %v3140_v22  ;;  %v1726_v50 = vmul.u32 56, %v1725_v23  ;;  %vm2010_vm2 = vcmp.ne.s32.totalorder %v3961_v41, 0  ;;  %v1941_v26 = vsub.s32 0, %v3965_v30 }
 0x1ca   :  { %v1948_v36 = vsub.s32 0, %v3967_v46  ;;  %vm1764_vm3 = vc.u32 %v3958_v32, 2454267026  ;;  %v3973_v61 = vpop.permute.xlu1 %1399  ;;  %vm2024_vm4 = vcmp.lt.s32.totalorder %v3961_v41, 0  ;;  %vm2011_vm5 = vcmp.ne.s32.totalorder %v3963_v37, 0 }
 0x1cb   :  { %vm2025_vm6 = vcmp.lt.s32.totalorder %v3963_v37, 0  ;;  %v1752_v0 = vadd.s32 %v3945_v9, %v1751_v18  ;;  %vm1926_vm7 = vcmp.lt.s32.totalorder %v3929_v44, 0  ;;  %v1931_v12 = vsub.s32 0, %v1930_v43  ;;  %vm3997_vm9 = vmand %vm2024_vm4, %vm2010_vm2 }
 0x1cc   :  { %v1938_v11 = vsub.s32 0, %v1937_v51  ;;  %v1740_v63 = vmul.u32 56, %v1739_v57  ;;  %vm1933_vm8 = vcmp.lt.s32.totalorder %v3931_v13, 0  ;;  %v1727_v7 = vsub.s32 %v3910_v53, %v1726_v50  ;;  %vm4007_vm10 = vmand %vm2025_vm6, %vm2011_vm5 }
 0x1cd   :  { %v1765_v60 = vsel %vm1764_vm3, 1, %v3140_v22  ;;  %v3984_v14 = vadd.s32 80, %v3830_v52  ;;  %v2492_v56 = vmin.u32 %v1941_v26, %v3965_v30  ;;  %v2493_v34 = vmin.u32 %v1948_v36, %v3967_v46 }
 0x1ce   :  { %v3989_v6 = vadd.s32 88, %v3830_v52  ;;  %v2052_v48 = vadd.s32 8, %v3961_v41  ;;  %v2053_v55 = vadd.s32 8, %v3963_v37  ;;  %v1753_v35 = vshrl.u32 %v1752_v0, 5  ;;  %v4036_v57 = vpop.permute.xlu0 %1401 }
 0x1cf   :  { %v4013_v45 = vsel %vm1926_vm7, %v1931_v12, %v1930_v43  ;;  %v4015_v9 = vsel %vm1933_vm8, %v1938_v11, %v1937_v51  ;;  %v1741_v19 = vsub.s32 %v3916_v2, %v1740_v63  ;;  %v1766_v24 = vadd.s32 %v3959_v3, %v1765_v60 }
 0x1d0   :  { %vm1834_vm11 = vcmp.ne.s32.totalorder %v1727_v7, 0  ;;  %vm1848_vm12 = vcmp.lt.s32.totalorder %v1727_v7, 0  ;;  %v4020_v28 = vmul.u32.u64.low 2454267026, %v3984_v14  ;;  %v4021_v15 = vmul.u32.u64.high 2454267026, %v3984_v14, %v4020_v28 }
 0x1d1   :  { %v1944_v10 = vand.u32 7, %v2492_v56  ;;  %v1951_v16 = vand.u32 7, %v2493_v34  ;;  %v4024_v8 = vmul.u32.u64.low 2454267026, %v3989_v6  ;;  %v4025_v23 = vmul.u32.u64.high 2454267026, %v3989_v6, %v4024_v8  ;;  %vm1862_vm1 = vmand %vm1848_vm12, %vm1834_vm11 }
 0x1d2   :  { %v3991_v40 = vpop.permute.xlu1 %1403  ;;  %v2066_v32 = vsel %vm3997_vm9, %v2052_v48, %v3961_v41  ;;  %v2067_v2 = vsel %vm4007_vm10, %v2053_v55, %v3963_v37  ;;  %v1876_v3 = vadd.s32 56, %v1727_v7  ;;  %v1754_v43 = vmul.u32 56, %v1753_v35 }
 0x1d3   :  { %vm2012_vm13 = vcmp.ne.s32.totalorder %v4013_v45, 0  ;;  %vm2026_vm14 = vcmp.lt.s32.totalorder %v4013_v45, 0  ;;  %vm1940_vm15 = vcmp.lt.s32.totalorder %v3965_v30, 0  ;;  %v1767_v51 = vshrl.u32 %v1766_v24, 5 }
 0x1d4   :  { %vm2013_vm2 = vcmp.ne.s32.totalorder %v4015_v9, 0  ;;  %vm1835_vm3 = vcmp.ne.s32.totalorder %v1741_v19, 0  ;;  %vm1849_vm4 = vcmp.lt.s32.totalorder %v1741_v19, 0  ;;  %vm1778_vm5 = vc.u32 %v4020_v28, 2454267026  ;;  %vm4067_vm12 = vmand %vm2026_vm14, %vm2012_vm13 }
 0x1d5   :  { %vm2027_vm6 = vcmp.lt.s32.totalorder %v4015_v9, 0  ;;  %v1945_v41 = vsub.s32 0, %v1944_v10  ;;  %v1952_v37 = vsub.s32 0, %v1951_v16  ;;  %vm1792_vm7 = vc.u32 %v4024_v8, 2454267026  ;;  %vm4046_vm9 = vmand %vm1849_vm4, %vm1835_vm3 }
 0x1d6   :  { %v4038_v18 = vpop.permute.xlu1 %1405  ;;  %vm1947_vm8 = vcmp.lt.s32.totalorder %v3967_v46, 0  ;;  %v4043_v50 = vsel %vm1862_vm1, %v1876_v3, %v1727_v7  ;;  %v1877_v26 = vadd.s32 56, %v1741_v19  ;;  %v1755_v36 = vsub.s32 %v3936_v20, %v1754_v43  ;;  %vm4084_vm13 = vmand %vm2027_vm6, %vm2013_vm2 }
 0x1d7   :  { %v1768_v12 = vmul.u32 56, %v1767_v51  ;;  %v1779_v11 = vsel %vm1778_vm5, 1, %v3140_v22  ;;  %v4052_v63 = vadd.s32 96, %v3830_v52  ;;  %vm1898_vm10 = vcmp.lt.s32.totalorder %v3907_v49, 32 }
 0x1d8   :  { %vm4059_vm11 = vcmp.lt.s32.totalorder %v2066_v32, 4  ;;  %v2054_v34 = vadd.s32 8, %v4013_v45  ;;  %v2055_v53 = vadd.s32 8, %v4015_v9  ;;  %v1793_v48 = vsel %vm1792_vm7, 1, %v3140_v22 }
 0x1d9   :  { %vm1899_vm1 = vcmp.lt.s32.totalorder %v3912_v58, 32  ;;  %vm4076_vm3 = vcmp.lt.s32.totalorder %v2067_v2, 4  ;;  %v4090_v47 = vsel %vm1940_vm15, %v1945_v41, %v1944_v10  ;;  %v4094_v24 = vsel %vm1947_vm8, %v1952_v37, %v1951_v16 }
 0x1da   :  { %v4054_v60 = vpop.permute.xlu0 %1407  ;;  %v1955_v28 = vsub.s32 0, %v4043_v50  ;;  %v4099_v8 = vsel %vm4046_vm9, %v1877_v26, %v1741_v19  ;;  %vm1836_vm14 = vcmp.ne.s32.totalorder %v1755_v36, 0  ;;  %vm1850_vm4 = vcmp.lt.s32.totalorder %v1755_v36, 0 }
 0x1db   :  { %v1780_v32 = vadd.s32 %v4021_v15, %v1779_v11  ;;  %v1769_v2 = vsub.s32 %v3948_v42, %v1768_v12  ;;  %v1794_v3 = vadd.s32 %v4025_v23, %v1793_v48  ;;  %v2068_v19 = vsel %vm4067_vm12, %v2054_v34, %v4013_v45  ;;  %vm1864_vm6 = vmand %vm1850_vm4, %vm1836_vm14 }
 0x1dc   :  { %v4105_v10 = vmul.u32.u64.low 2454267026, %v4052_v63  ;;  %v4106_v43 = vmul.u32.u64.high 2454267026, %v4052_v63, %v4105_v10  ;;  %v2069_v15 = vsel %vm4084_vm13, %v2055_v53, %v4015_v9  ;;  %v1878_v41 = vadd.s32 56, %v1755_v36 }
 0x1dd   :  { %v4119_v42 = vadd.s32 104, %v3830_v52  ;;  %vm2014_vm15 = vcmp.ne.s32.totalorder %v4090_v47, 0  ;;  %vm2028_vm2 = vcmp.lt.s32.totalorder %v4090_v47, 0  ;;  %v2056_v23 = vadd.s32 8, %v4090_v47 }
 0x1de   :  { %v4056_v56 = vpop.permute.xlu1 %1409  ;;  %vm2015_vm5 = vcmp.ne.s32.totalorder %v4094_v24, 0  ;;  %vm2029_vm7 = vcmp.lt.s32.totalorder %v4094_v24, 0  ;;  %v4129_v45 = vmin.u32 %v1955_v28, %v4043_v50  ;;  %v1962_v9 = vsub.s32 0, %v4099_v8  ;;  %vm4141_vm14 = vmand %vm2028_vm2, %vm2014_vm15 }
 0x1df   :  { %v1781_v52 = vshrl.u32 %v1780_v32, 5  ;;  %vm1837_vm8 = vcmp.ne.s32.totalorder %v1769_v2, 0  ;;  %vm1851_vm9 = vcmp.lt.s32.totalorder %v1769_v2, 0  ;;  %v1795_v37 = vshrl.u32 %v1794_v3, 5  ;;  %vm4160_vm15 = vmand %vm2029_vm7, %vm2015_vm5 }
 0x1e0   :  { %vm1806_vm12 = vc.u32 %v4105_v10, 2454267026  ;;  %vm1900_vm13 = vcmp.lt.s32.totalorder %v3929_v44, 32  ;;  %v4145_v11 = vsel %vm1864_vm6, %v1878_v41, %v1755_v36  ;;  %vm4151_vm4 = vcmp.lt.s32.totalorder %v2068_v19, 4  ;;  %vm4172_vm6 = vmand %vm1851_vm9, %vm1837_vm8 }
 0x1e1   :  { %v4148_v20 = vmul.u32.u64.low 2454267026, %v4119_v42  ;;  %v4149_v34 = vmul.u32.u64.high 2454267026, %v4119_v42, %v4148_v20  ;;  %vm1901_vm0 = vcmp.lt.s32.totalorder %v3931_v13, 32  ;;  %v2057_v36 = vadd.s32 8, %v4094_v24  ;;  %vm4182_vm5 = vmand %vm1898_vm10, %vm4059_vm11 }
 0x1e2   :  { %v4108_v16 = vpop.permute.xlu0 %1411  ;;  %v1879_v35 = vadd.s32 56, %v1769_v2  ;;  %vm4165_vm2 = vcmp.lt.s32.totalorder %v2069_v15, 4  ;;  %v1958_v32 = vand.u32 7, %v4129_v45  ;;  %v1782_v19 = vmul.u32 56, %v1781_v52  ;;  %vm4201_vm10 = vmand %vm1899_vm1, %vm4076_vm3 }
 0x1e3   :  { %v1807_v41 = vsel %vm1806_vm12, 1, %v3140_v22  ;;  %v2070_v45 = vsel %vm4141_vm14, %v2056_v23, %v4090_v47  ;;  %v4190_v1 = vmin.u32 %v1962_v9, %v4099_v8  ;;  %v1969_v52 = vsub.s32 0, %v4145_v11  ;;  %vm4209_vm9 = vmand %vm1900_vm13, %vm4151_vm4 }
 0x1e4   :  { %v1796_v17 = vmul.u32 56, %v1795_v37  ;;  %vm1553_vm7 = vcmask 261120   ;;  %vm1582_vm8 = vcmask 785408   ;;  %vm1820_vm11 = vc.u32 %v4148_v20, 2454267026  ;;  %vm4226_vm1 = vmand %vm1901_vm0, %vm4165_vm2 }
 0x1e5   :  { %vm1902_vm12 = vcmp.lt.s32.totalorder %v3965_v30, 32  ;;  %v2071_v55 = vsel %vm4160_vm15, %v2057_v36, %v4094_v24  ;;  %v4219_v58 = vsel %vm4172_vm6, %v1879_v35, %v1769_v2  ;;  %v1808_v23 = vadd.s32 %v4106_v43, %v1807_v41 }
 0x1e6   :  { %v4110_v51 = vpop.permute.xlu1 %1413  ;;  %vm4230_vm3 = vcmp.lt.s32.totalorder %v2070_v45, 4  ;;  %vm1954_vm13 = vcmp.lt.s32.totalorder %v4043_v50, 0  ;;  %v1959_v24 = vsub.s32 0, %v1958_v32  ;;  %v1783_v2 = vsub.s32 %v3984_v14, %v1782_v19 }
 0x1e7   :  { %v1965_v37 = vand.u32 7, %v4190_v1  ;;  %v4238_v43 = vmin.u32 %v1969_v52, %v4145_v11  ;;  %v1797_v13 = vsub.s32 %v3989_v6, %v1796_v17  ;;  %v1821_v12 = vsel %vm1820_vm11, 1, %v3140_v22  ;;  %vm2098_vm4 = vmand %vm1902_vm12, %vm4230_vm3 }
 0x1e8   :  { %v4680_v48 = vmov 0.0   ;;  %vm1903_vm0 = vcmp.lt.s32.totalorder %v3967_v46, 32  ;;  %vm2085_vm14 = vcmp.lt.s32.totalorder %v2071_v55, 4  ;;  %v1976_v1 = vsub.s32 0, %v4219_v58 }
 0x1e9   :  { %v2502_v36 = vsel %vm4182_vm5, 1.0, %v4680_v48  ;;  %v2503_v14 = vsel %vm4201_vm10, 1.0, %v4680_v48  ;;  %v4257_v17 = vsel %vm4209_vm9, 1.0, %v4680_v48  ;;  %v4262_v22 = vsel %vm4226_vm1, 1.0, %v4680_v48  ;;  %vm4273_vm6 = vmand %vm1903_vm0, %vm2085_vm14 }
 0x1ea   :  { %v4132_v26 = vpop.permute.xlu0 %1415  ;;  %v1809_v46 = vshrl.u32 %v1808_v23, 5  ;;  %v4270_v6 = vsel %vm1954_vm13, %v1959_v24, %v1958_v32  ;;  %vm1838_vm15 = vcmp.ne.s32.totalorder %v1783_v2, 0  ;;  %vm1852_vm2 = vcmp.lt.s32.totalorder %v1783_v2, 0  ;;  %v4284_v32 = vld [vmem:[%s4638_s3] ss:$0 sm:$0xff]  ;;  %s3141_s3 = smov [#allocation3]  }
 0x1eb   :  { %v1822_v35 = vadd.s32 %v4149_v34, %v1821_v12  ;;  %v1966_v3 = vsub.s32 0, %v1965_v37  ;;  %v1972_v19 = vand.u32 7, %v4238_v43  ;;  %vm1839_vm5 = vcmp.ne.s32.totalorder %v1797_v13, 0  ;;  %vm4294_vm12 = vmand %vm1852_vm2, %vm1838_vm15  ;;  %s2281_s0 = sshll.u32 %s3141_s3, 4  ;;  %s2282_s0 = int_to_ptr.vmem [resolvable:$true] %s2281_s0 }
 0x1ec   :  { %vm1853_vm10 = vcmp.lt.s32.totalorder %v1797_v13, 0  ;;  %v1554_v30 = vsel %vm1553_vm7, %v3779_v38, %v3973_v61  ;;  %v4287_v15 = vsel %vm2098_vm4, 1.0, %v4680_v48  ;;  %vm1961_vm11 = vcmp.lt.s32.totalorder %v4099_v8, 0  ;;  %s3072_s14 = scalar_lea.vmem %s2282_s0, 896  ;;  %p3077_p1 = scmp.lt.s32.totalorder %s2282_s0, %s2282_s0 }
 0x1ed   :  { %v2497_v45 = vmin.u32 %v1976_v1, %v4219_v58  ;;  %vm4683_vm9 = vcmask 523264   ;;  %v1880_v61 = vadd.s32 56, %v1783_v2  ;;  %v1881_v49 = vadd.s32 56, %v1797_v13  ;;  %vm1867_vm3 = vmand %vm1853_vm10, %vm1839_vm5  ;;  %p3073_p0 = scmp.ne.s32.totalorder %s2282_s0, %s3072_s14  ;;  %p3078_p2 = scmp.lt.s32.totalorder %s3072_s14, %s3072_s14 }
 0x1ee   :  { %v4134_v0 = vpop.permute.xlu1 %1417  ;;  %v1810_v47 = vmul.u32 56, %v1809_v46  ;;  %v4302_v23 = vsel %vm4273_vm6, 1.0, %v4680_v48  ;;  %vm2016_vm1 = vcmp.ne.s32.totalorder %v4270_v6, 0  ;;  %v1823_v44 = vshrl.u32 %v1822_v35, 5  ;;  %vm4686_vm14 = vmmov %vm4683_vm9 }
 0x1ef   :  { %vm2030_vm13 = vcmp.lt.s32.totalorder %v4270_v6, 0  ;;  %v4309_v24 = vsel %vm1961_vm11, %v1966_v3, %v1965_v37  ;;  %v1973_v43 = vsub.s32 0, %v1972_v19  ;;  %v1555_v12 = vsel %vm1553_vm7, %v3782_v29, %v4036_v57  ;;  %p3079_p3 = por %p3078_p2, %p3077_p1 }
 0x1f0   :  { %v2058_v28 = vadd.s32 8, %v4270_v6  ;;  %vm1968_vm0 = vcmp.lt.s32.totalorder %v4145_v11, 0  ;;  %v4321_v37 = vsel %vm1867_vm3, %v1881_v49, %v1797_v13  ;;  %v1811_v3 = vsub.s32 %v4052_v63, %v1810_v47  ;;  %vm4340_vm6 = vmand %vm2030_vm13, %vm2016_vm1 }
 0x1f1   :  { %vm2017_vm4 = vcmp.ne.s32.totalorder %v4309_v24, 0  ;;  %vm2031_vm15 = vcmp.lt.s32.totalorder %v4309_v24, 0  ;;  %v1824_v29 = vmul.u32 56, %v1823_v44  ;;  %v4331_v38 = vsel %vm1968_vm0, %v1973_v43, %v1972_v19  ;;  %vm4691_vm3 = vmmov %vm4686_vm14  ;;  %p3080_p4 = pnand %p3079_p3, %p3073_p0 }
 0x1f2   :  { %v4193_v10 = vpop.permute.xlu0 %1419  ;;  %vm1975_vm2 = vcmp.lt.s32.totalorder %v4219_v58, 0  ;;  %vm1840_vm5 = vcmp.ne.s32.totalorder %v1811_v3, 0  ;;  %vm1854_vm10 = vcmp.lt.s32.totalorder %v1811_v3, 0  ;;  %vm1904_vm11 = vcmp.lt.s32.totalorder %v4043_v50, 32  ;;  %vm4355_vm1 = vmand %vm2031_vm15, %vm2017_vm4 }
 0x1f3   :  { %v1882_v19 = vadd.s32 56, %v1811_v3  ;;  %vm1868_vm13 = vmand %vm1854_vm10, %vm1840_vm5 }
 0x1f4   :  { %vm4694_vm15 = vmmov %vm4691_vm3 }
 0x1f6   :  { %v4195_v7 = vpop.permute.xlu1 %1421 }
 0x1fa   :  { %v4242_v20 = vpop.permute.xlu0 %1423 }
 0x1fe   :  { %v4244_v53 = vpop.permute.xlu1 %1425 }
 0x202   :  { %v1512_v41 = vpop.permute.xlu0 %1511  ;;  %v1456_v34 = vpop.permute.xlu1 %1455 }
 0x203   :  { %v1568_v52 = vsel %vm4683_vm9, %v1554_v30, %v1456_v34  ;;  %v1979_v30 = vand.u32 7, %v2497_v45  ;;  %vm2018_vm9 = vcmp.ne.s32.totalorder %v4331_v38, 0 }
 0x204   :  { %v1583_v55 = vsel %vm1582_vm8, %v1568_v52, %v1512_v41  ;;  %v4319_v41 = vsel %vm4294_vm12, %v1880_v61, %v1783_v2  ;;  %v4329_v52 = vadd.s32 8, %v4309_v24  ;;  %v1990_v61 = vsub.s32 0, %v4321_v37 }
 0x205   :  { %v1603_v9 = vadd.f32 %v4284_v32, %v1583_v55  ;;  %v1980_v13 = vsub.s32 0, %v1979_v30  ;;  %v1983_v63 = vsub.s32 0, %v4319_v41  ;;  %vm2032_vm12 = vcmp.lt.s32.totalorder %v4331_v38, 0 }
 0x206   :  { %v1458_v1 = vpop.permute.xlu0 %1457  ;;  %v1514_v46 = vpop.permute.xlu1 %1513  ;;  %v1556_v55 = vsel %vm1553_vm7, %v3785_v39, %v3991_v40  ;;  %v2072_v39 = vsel %vm4340_vm6, %v2058_v28, %v4270_v6  ;;  %v4364_v40 = vadd.s32 8, %v4331_v38  ;;  %vm4377_vm0 = vmand %vm2032_vm12, %vm2018_vm9  ;;  %v4385_v28 = vmin.u32 %v1990_v61, %v4321_v37 }
 0x207   :  { %v1569_v35 = vsel %vm4686_vm14, %v1555_v12, %v1458_v1  ;;  %v2136_v57 = vmul.f32 %v2502_v36, %v1603_v9  ;;  %v4382_v6 = vmin.u32 %v1983_v63, %v4319_v41  ;;  %v2073_v63 = vsel %vm4355_vm1, %v4329_v52, %v4309_v24  ;;  %vm4699_vm1 = vmmov %vm4691_vm3 }
 0x208   :  { %v1584_v34 = vsel %vm1582_vm8, %v1569_v35, %v1514_v46  ;;  %v4368_v35 = vsel %vm1975_vm2, %v1980_v13, %v1979_v30  ;;  %v1557_v30 = vsel %vm1553_vm7, %v3788_v59, %v4038_v18  ;;  %vm4392_vm2 = vcmp.lt.s32.totalorder %v2072_v39, 4 }
 0x209   :  { %v1604_v45 = vadd.f32 %v4284_v32, %v1584_v34  ;;  %v2170_v44 = vmul.f32 %v2136_v57, %v2136_v57  ;;  %v4400_v61 = vsel %vm1868_vm13, %v1882_v19, %v1811_v3  ;;  %v2074_v36 = vsel %vm4377_vm0, %v4364_v40, %v4331_v38  ;;  %vm2100_vm13 = vmand %vm1904_vm11, %vm4392_vm2 }
 0x20a   :  { %v1460_v2 = vpop.permute.xlu0 %1459  ;;  %vm2019_vm6 = vcmp.ne.s32.totalorder %v4368_v35, 0  ;;  %vm2033_vm5 = vcmp.lt.s32.totalorder %v4368_v35, 0  ;;  %v1986_v24 = vand.u32 7, %v4382_v6  ;;  %vm1905_vm9 = vcmp.lt.s32.totalorder %v4099_v8, 32  ;;  %vm4702_vm11 = vmmov %vm4699_vm1 }
 0x20b   :  { %v2137_v49 = vmul.f32 %v2503_v14, %v1604_v45  ;;  %v2555_v47 = vpack.c.bf16 %v1604_v45, %v1603_v9  ;;  %v1825_v14 = vsub.s32 %v4119_v42, %v1824_v29  ;;  %v1570_v46 = vsel %vm4691_vm3, %v1556_v55, %v1460_v2  ;;  %vm4448_vm0 = vmand %vm2033_vm5, %vm2019_vm6 }
 0x20c   :  { %v1993_v38 = vand.u32 7, %v4385_v28  ;;  %v1997_v19 = vsub.s32 0, %v4400_v61  ;;  %vm1906_vm12 = vcmp.lt.s32.totalorder %v4145_v11, 32  ;;  %vm1982_vm3 = vcmp.lt.s32.totalorder %v4319_v41, 0  ;;  %vm4707_vm6 = vmmov %vm4699_vm1 }
 0x20d   :  { %v2150_v9 = vadd.f32 %v2137_v49, %v2136_v57  ;;  %v2171_v43 = vmul.f32 %v2137_v49, %v2137_v49  ;;  %2556 = vst [vmem:[#allocation3] sm:$0xff] %v2555_v47   ;;  %v1462_v12 = vpop.permute.xlu1 %1461  ;;  %vm1841_vm14 = vcmp.ne.s32.totalorder %v1825_v14, 0  ;;  %vm1855_vm4 = vcmp.lt.s32.totalorder %v1825_v14, 0 }
 0x20e   :  { %v1516_v42 = vpop.permute.xlu0 %1515  ;;  %v1571_v2 = vsel %vm4694_vm15, %v1557_v30, %v1462_v12  ;;  %v1883_v55 = vadd.s32 56, %v1825_v14  ;;  %vm4414_vm10 = vmand %vm1855_vm4, %vm1841_vm14  ;;  %v1559_v57 = vsel %vm1553_vm7, %v3794_v5, %v4056_v56  ;;  %v1994_v28 = vsub.s32 0, %v1993_v38 }
 0x20f   :  { %v2184_v34 = vadd.f32 %v2171_v43, %v2170_v44  ;;  %v1585_v29 = vsel %vm1582_vm8, %v1570_v46, %v1516_v42  ;;  %v1558_v43 = vsel %vm1553_vm7, %v3791_v4, %v4054_v60  ;;  %v4427_v42 = vadd.s32 8, %v4368_v35 }
 0x210   :  { %v1605_v45 = vadd.f32 %v4284_v32, %v1585_v29  ;;  %v4433_v29 = vsel %vm4414_vm10, %v1883_v55, %v1825_v14  ;;  %v2500_v30 = vmin.u32 %v1997_v19, %v4400_v61  ;;  %vm1989_vm14 = vcmp.lt.s32.totalorder %v4321_v37, 0 }
 0x211   :  { %v1518_v13 = vpop.permute.xlu1 %1517  ;;  %v2004_v5 = vsub.s32 0, %v4433_v29  ;;  %vm4459_vm4 = vcmp.lt.s32.totalorder %v2073_v63, 4  ;;  %vm4464_vm15 = vcmp.lt.s32.totalorder %v2074_v36, 4  ;;  %vm1907_vm2 = vcmp.lt.s32.totalorder %v4219_v58, 32 }
 0x212   :  { %v2138_v59 = vmul.f32 %v4257_v17, %v1605_v45  ;;  %v1586_v18 = vsel %vm1582_vm8, %v1571_v2, %v1518_v13  ;;  %v1464_v47 = vpop.permute.xlu0 %1463  ;;  %v1560_v36 = vsel %vm1553_vm7, %v3797_v27, %v4108_v16  ;;  %v1561_v16 = vsel %vm1553_vm7, %v3800_v21, %v4110_v51 }
 0x213   :  { %v1606_v44 = vadd.f32 %v4284_v32, %v1586_v18  ;;  %v1572_v39 = vsel %vm4699_vm1, %v1558_v43, %v1464_v47  ;;  %vm2101_vm1 = vmand %vm1905_vm9, %vm4459_vm4 }
 0x214   :  { %v2151_v3 = vadd.f32 %v2150_v9, %v2138_v59  ;;  %v2172_v52 = vmul.f32 %v2138_v59, %v2138_v59  ;;  %v2508_v59 = vsel %vm2100_vm13, 1.0, %v4680_v48  ;;  %vm2102_vm13 = vmand %vm1906_vm12, %vm4464_vm15  ;;  %v2509_v21 = vsel %vm2101_vm1, 1.0, %v4680_v48 }
 0x215   :  { %v2139_v12 = vmul.f32 %v4262_v22, %v1606_v44  ;;  %v2560_v1 = vpack.c.bf16 %v1606_v44, %v1605_v45  ;;  %v1466_v46 = vpop.permute.xlu1 %1465  ;;  %vm1908_vm12 = vcmp.lt.s32.totalorder %v4319_v41, 32 }
 0x216   :  { %v2185_v9 = vadd.f32 %v2184_v34, %v2172_v52  ;;  %v1520_v40 = vpop.permute.xlu0 %1519  ;;  %v1987_v34 = vsub.s32 0, %v1986_v24  ;;  %v1573_v45 = vsel %vm4702_vm11, %v1559_v57, %v1466_v46  ;;  %v2000_v52 = vand.u32 7, %v2500_v30  ;;  %vm4708_vm11 = vmmov %vm4707_vm6 }
 0x217   :  { %v2152_v4 = vadd.f32 %v2151_v3, %v2139_v12  ;;  %v2173_v60 = vmul.f32 %v2139_v12, %v2139_v12  ;;  %2588 = vst [vmem:[#allocation3 + $0x8] sm:$0xff] %v2560_v1   ;;  %v1587_v22 = vsel %vm1582_vm8, %v1572_v39, %v1520_v40  ;;  %v4477_v3 = vsel %vm1989_vm14, %v1994_v28, %v1993_v38 }
 0x218   :  { %v1607_v6 = vadd.f32 %v4284_v32, %v1587_v22  ;;  %v4474_v44 = vsel %vm1982_vm3, %v1987_v34, %v1986_v24  ;;  %vm1996_vm3 = vcmp.lt.s32.totalorder %v4400_v61, 0  ;;  %vm2035_vm9 = vcmp.lt.s32.totalorder %v4477_v3, 0 }
 0x219   :  { %v2186_v50 = vadd.f32 %v2185_v9, %v2173_v60  ;;  %v1522_v2 = vpop.permute.xlu1 %1521  ;;  %vm2020_vm5 = vcmp.ne.s32.totalorder %v4474_v44, 0  ;;  %vm2034_vm10 = vcmp.lt.s32.totalorder %v4474_v44, 0  ;;  %v2001_v9 = vsub.s32 0, %v2000_v52 }
 0x21a   :  { %v2140_v56 = vmul.f32 %v4287_v15, %v1607_v6  ;;  %v1588_v13 = vsel %vm1582_vm8, %v1573_v45, %v1522_v2  ;;  %v1468_v49 = vpop.permute.xlu0 %1467  ;;  %v2075_v15 = vsel %vm4448_vm0, %v4427_v42, %v4368_v35  ;;  %v4484_v35 = vmin.u32 %v2004_v5, %v4433_v29  ;;  %vm4517_vm14 = vmand %vm2034_vm10, %vm2020_vm5 }
 0x21b   :  { %v1608_v47 = vadd.f32 %v4284_v32, %v1588_v13  ;;  %v1574_v1 = vsel %vm4707_vm6, %v1560_v36, %v1468_v49  ;;  %vm2021_vm0 = vcmp.ne.s32.totalorder %v4477_v3, 0  ;;  %v2062_v11 = vadd.s32 8, %v4474_v44 }
 0x21c   :  { %v2153_v17 = vadd.f32 %v2152_v4, %v2140_v56  ;;  %v2174_v63 = vmul.f32 %v2140_v56, %v2140_v56  ;;  %v2007_v4 = vand.u32 7, %v4484_v35  ;;  %v2510_v57 = vsel %vm2102_vm13, 1.0, %v4680_v48  ;;  %vm4530_vm15 = vmand %vm2035_vm9, %vm2021_vm0 }
 0x21d   :  { %v2141_v19 = vmul.f32 %v4302_v23, %v1608_v47  ;;  %v2565_v43 = vpack.c.bf16 %v1608_v47, %v1607_v6  ;;  %v1470_v12 = vpop.permute.xlu1 %1469  ;;  %v2063_v14 = vadd.s32 8, %v4477_v3  ;;  %vm4522_vm4 = vcmp.lt.s32.totalorder %v2075_v15, 4  ;;  %vm4715_vm13 = vmmov %vm4707_vm6 }
 0x21e   :  { %v2187_v24 = vadd.f32 %v2186_v50, %v2174_v63  ;;  %v1524_v46 = vpop.permute.xlu0 %1523  ;;  %v1575_v8 = vsel %vm4708_vm11, %v1561_v16, %v1470_v12  ;;  %v2002_v2 = vsel %vm1996_vm3, %v2001_v9, %v2000_v52  ;;  %v1562_v5 = vsel %vm1553_vm7, %v3803_v31, %v4132_v26  ;;  %vm2103_vm10 = vmand %vm1907_vm2, %vm4522_vm4 }
 0x21f   :  { %v2154_v38 = vadd.f32 %v2153_v17, %v2141_v19  ;;  %v2175_v42 = vmul.f32 %v2141_v19, %v2141_v19  ;;  %2589 = vst [vmem:[#allocation3 + $0x10] sm:$0xff] %v2565_v43   ;;  %v1589_v27 = vsel %vm1582_vm8, %v1574_v1, %v1524_v46  ;;  %v2076_v15 = vsel %vm4517_vm14, %v2062_v11, %v4474_v44 }
 0x220   :  { %v1609_v23 = vadd.f32 %v4284_v32, %v1589_v27  ;;  %vm2003_vm5 = vcmp.lt.s32.totalorder %v4433_v29, 0  ;;  %v2077_v31 = vsel %vm4530_vm15, %v2063_v14, %v4477_v3  ;;  %v1563_v26 = vsel %vm1553_vm7, %v3806_v25, %v4134_v0 }
 0x221   :  { %v2188_v39 = vadd.f32 %v2187_v24, %v2175_v42  ;;  %v1526_v40 = vpop.permute.xlu1 %1525  ;;  %vm2022_vm1 = vcmp.ne.s32.totalorder %v2002_v2, 0  ;;  %vm2036_vm3 = vcmp.lt.s32.totalorder %v2002_v2, 0  ;;  %vm2090_vm0 = vcmp.lt.s32.totalorder %v2076_v15, 4 }
 0x222   :  { %v2142_v60 = vmul.f32 %v2508_v59, %v1609_v23  ;;  %v1590_v51 = vsel %vm1582_vm8, %v1575_v8, %v1526_v40  ;;  %v1472_v22 = vpop.permute.xlu0 %1471  ;;  %v2008_v59 = vsub.s32 0, %v2007_v4  ;;  %v2511_v35 = vsel %vm2103_vm10, 1.0, %v4680_v48  ;;  %vm4562_vm9 = vmand %vm2036_vm3, %vm2022_vm1 }
 0x223   :  { %v1610_v34 = vadd.f32 %v4284_v32, %v1590_v51  ;;  %v1576_v47 = vsel %vm4707_vm6, %v1562_v5, %v1472_v22  ;;  %v2064_v1 = vadd.s32 8, %v2002_v2  ;;  %vm1909_vm2 = vcmp.lt.s32.totalorder %v4321_v37, 32  ;;  %vm4568_vm14 = vmand %vm1908_vm12, %vm2090_vm0 }
 0x224   :  { %v2155_v28 = vadd.f32 %v2154_v38, %v2142_v60  ;;  %v2176_v30 = vmul.f32 %v2142_v60, %v2142_v60  ;;  %v2009_v12 = vsel %vm2003_vm5, %v2008_v59, %v2007_v4  ;;  %vm2091_vm11 = vcmp.lt.s32.totalorder %v2077_v31, 4  ;;  %vm4724_vm10 = vmmov %vm4707_vm6 }
 0x225   :  { %v2143_v56 = vmul.f32 %v2509_v21, %v1610_v34  ;;  %v2570_v13 = vpack.c.bf16 %v1610_v34, %v1609_v23  ;;  %v1474_v49 = vpop.permute.xlu1 %1473  ;;  %vm2023_vm4 = vcmp.ne.s32.totalorder %v2009_v12, 0  ;;  %vm2037_vm15 = vcmp.lt.s32.totalorder %v2009_v12, 0  ;;  %vm4578_vm5 = vmand %vm1909_vm2, %vm2091_vm11 }
 0x226   :  { %v2189_v18 = vadd.f32 %v2188_v39, %v2176_v30  ;;  %v1528_v55 = vpop.permute.xlu0 %1527  ;;  %v1577_v19 = vsel %vm4715_vm13, %v1563_v26, %v1474_v49  ;;  %v1564_v27 = vsel %vm1553_vm7, %v3809_v33, %v4193_v10  ;;  %v2078_v4 = vsel %vm4562_vm9, %v2064_v1, %v2002_v2  ;;  %vm4590_vm12 = vmand %vm2037_vm15, %vm2023_vm4 }
 0x227   :  { %v2156_v17 = vadd.f32 %v2155_v28, %v2143_v56  ;;  %v2177_v63 = vmul.f32 %v2143_v56, %v2143_v56  ;;  %2590 = vst [vmem:[#allocation3 + $0x18] sm:$0xff] %v2570_v13   ;;  %v1591_v52 = vsel %vm1582_vm8, %v1576_v47, %v1528_v55  ;;  %v2065_v60 = vadd.s32 8, %v2009_v12  ;;  %vm4725_vm11 = vmmov %vm4707_vm6 }
 0x228   :  { %v1611_v44 = vadd.f32 %v4284_v32, %v1591_v52  ;;  %v2512_v33 = vsel %vm4568_vm14, 1.0, %v4680_v48  ;;  %v1565_v22 = vsel %vm1553_vm7, %v3812_v62, %v4195_v7  ;;  %vm1910_vm1 = vcmp.lt.s32.totalorder %v4400_v61, 32  ;;  %vm4727_vm14 = vmmov %vm4707_vm6 }
 0x229   :  { %v2190_v36 = vadd.f32 %v2189_v18, %v2177_v63  ;;  %v1530_v43 = vpop.permute.xlu1 %1529  ;;  %vm2092_vm3 = vcmp.lt.s32.totalorder %v2078_v4, 4  ;;  %v2513_v28 = vsel %vm4578_vm5, 1.0, %v4680_v48  ;;  %v2079_v62 = vsel %vm4590_vm12, %v2065_v60, %v2009_v12 }
 0x22a   :  { %v2144_v58 = vmul.f32 %v2510_v57, %v1611_v44  ;;  %v1592_v24 = vsel %vm1582_vm8, %v1577_v19, %v1530_v43  ;;  %v1476_v3 = vpop.permute.xlu0 %1475  ;;  %vm2106_vm13 = vmand %vm1910_vm1, %vm2092_vm3  ;;  %vm1911_vm0 = vcmp.lt.s32.totalorder %v4433_v29, 32  ;;  %v1566_v61 = vsel %vm1553_vm7, %v3815_v54, %v4242_v20  ;;  %v4726_v54 = vld [vmem:[#allocation10_spill] sm:$0xff] }
 0x22b   :  { %v1612_v46 = vadd.f32 %v4284_v32, %v1592_v24  ;;  %v1578_v8 = vsel %vm4707_vm6, %v1564_v27, %v1476_v3  ;;  %vm2093_vm2 = vcmp.lt.s32.totalorder %v2079_v62, 4  ;;  %v2514_v15 = vsel %vm2106_vm13, 1.0, %v4680_v48 }
 0x22c   :  { %v2157_v0 = vadd.f32 %v2156_v17, %v2144_v58  ;;  %v2178_v38 = vmul.f32 %v2144_v58, %v2144_v58  ;;  %vm2107_vm9 = vmand %vm1911_vm0, %vm2093_vm2  ;;  %v1567_v20 = vsel %vm1553_vm7, %v4726_v54, %v4244_v53 }
 0x22d   :  { %v2145_v16 = vmul.f32 %v2511_v35, %v1612_v46  ;;  %v2575_v23 = vpack.c.bf16 %v1612_v46, %v1611_v44  ;;  %v1478_v9 = vpop.permute.xlu1 %1477 }
 0x22e   :  { %v2191_v39 = vadd.f32 %v2190_v36, %v2178_v38  ;;  %v1532_v40 = vpop.permute.xlu0 %1531  ;;  %v1579_v57 = vsel %vm4724_vm10, %v1565_v22, %v1478_v9  ;;  %v2515_v36 = vsel %vm2107_vm9, 1.0, %v4680_v48 }
 0x22f   :  { %v2158_v21 = vadd.f32 %v2157_v0, %v2145_v16  ;;  %v2179_v51 = vmul.f32 %v2145_v16, %v2145_v16  ;;  %2591 = vst [vmem:[#allocation3 + $0x20] sm:$0xff] %v2575_v23   ;;  %v1593_v10 = vsel %vm1582_vm8, %v1578_v8, %v1532_v40 }
 0x230   :  { %v1613_v11 = vadd.f32 %v4284_v32, %v1593_v10 }
 0x231   :  { %v2192_v34 = vadd.f32 %v2191_v39, %v2179_v51  ;;  %v1534_v6 = vpop.permute.xlu1 %1533 }
 0x232   :  { %v2146_v14 = vmul.f32 %v2512_v33, %v1613_v11  ;;  %v1594_v30 = vsel %vm1582_vm8, %v1579_v57, %v1534_v6  ;;  %v1480_v50 = vpop.permute.xlu0 %1479 }
 0x233   :  { %v1614_v7 = vadd.f32 %v4284_v32, %v1594_v30  ;;  %v1580_v49 = vsel %vm4725_vm11, %v1566_v61, %v1480_v50 }
 0x234   :  { %v2159_v45 = vadd.f32 %v2158_v21, %v2146_v14  ;;  %v2180_v2 = vmul.f32 %v2146_v14, %v2146_v14 }
 0x235   :  { %v2147_v5 = vmul.f32 %v2513_v28, %v1614_v7  ;;  %v2580_v56 = vpack.c.bf16 %v1614_v7, %v1613_v11  ;;  %v1482_v55 = vpop.permute.xlu1 %1481 }
 0x236   :  { %v2193_v13 = vadd.f32 %v2192_v34, %v2180_v2  ;;  %v1536_v59 = vpop.permute.xlu0 %1535  ;;  %v1581_v31 = vsel %vm4727_vm14, %v1567_v20, %v1482_v55 }
 0x237   :  { %v2160_v18 = vadd.f32 %v2159_v45, %v2147_v5  ;;  %v2181_v47 = vmul.f32 %v2147_v5, %v2147_v5  ;;  %2592 = vst [vmem:[#allocation3 + $0x28] sm:$0xff] %v2580_v56   ;;  %v1595_v17 = vsel %vm1582_vm8, %v1580_v49, %v1536_v59 }
 0x238   :  { %v1615_v63 = vadd.f32 %v4284_v32, %v1595_v17 }
 0x239   :  { %v2194_v52 = vadd.f32 %v2193_v13, %v2181_v47 }
 0x23a   :  { %v2148_v26 = vmul.f32 %v2514_v15, %v1615_v63  ;;  %v1538_v44 = vpop.permute.xlu0 %1537 }
 0x23b   :  { %v1596_v19 = vsel %vm1582_vm8, %v1581_v31, %v1538_v44 }
 0x23c   :  { %v2161_v43 = vadd.f32 %v2160_v18, %v2148_v26  ;;  %v2182_v12 = vmul.f32 %v2148_v26, %v2148_v26  ;;  %v1616_v29 = vadd.f32 %v4284_v32, %v1596_v19 }
 0x23e   :  { %v2195_v58 = vadd.f32 %v2194_v52, %v2182_v12  ;;  %v2149_v35 = vmul.f32 %v2515_v36, %v1616_v29  ;;  %v2585_v24 = vpack.c.bf16 %v1616_v29, %v1615_v63 }
 0x240   :  { %v2162_v53 = vadd.f32 %v2161_v43, %v2149_v35  ;;  %v2183_v3 = vmul.f32 %v2149_v35, %v2149_v35  ;;  %2593 = vst [vmem:[#allocation3 + $0x30] sm:$0xff] %v2585_v24  }
 0x241   :  { %3083 = shalt.err (!%p3080_p4)
}
 0x242   :  { %s3142_s15 = smov 4   ;;  %v2163_v48 = vrot.slane %v2162_v53, 4  ;;  %v2196_v32 = vadd.f32 %v2195_v58, %v2183_v3  ;;  %s3143_s18 = smov [#allocation5]  }
 0x243   :  { %2287 = dma.vmem_to_hbm [thread:$0]  %s2282_s0, 896, %s4639_s4, [#allocation4], %s3137_s25, %s3137_s25, %s3142_s15  }
 0x244   :  { %v2164_v1 = vadd.f32 %v2163_v48, %v2162_v53  ;;  %v2197_v46 = vrot.slane %v2196_v32, 4  ;;  %s2294_s19 = sshll.u32 %s3143_s18, 4  ;;  %s3144_s20 = smov [#allocation7]   ;;  %s2295_s19 = int_to_ptr.vmem [resolvable:$true] %s2294_s19 }
 0x245   :  { %s2304_s21 = sshll.u32 %s3144_s20, 4  ;;  %s3092_s4 = scalar_lea.vmem %s2295_s19, 16  ;;  %s2305_s21 = int_to_ptr.vmem [resolvable:$true] %s2304_s21 }
 0x246   :  { %v2165_v25 = vrot.slane %v2164_v1, 2  ;;  %v2198_v0 = vadd.f32 %v2197_v46, %v2196_v32  ;;  %p3093_p5 = scmp.ne.s32.totalorder %s2295_s19, %s3092_s4  ;;  %s3096_s25 = scalar_lea.vmem %s2295_s19, 32 }
 0x247   :  { %p3097_p6 = scmp.lt.s32.totalorder %s2295_s19, %s2295_s19  ;;  %p3098_p7 = scmp.lt.s32.totalorder %s3096_s25, %s3092_s4 }
 0x248   :  { %v2166_v38 = vadd.f32 %v2165_v25, %v2164_v1  ;;  %v2199_v42 = vrot.slane %v2198_v0, 2 }
 0x249   :  { %p3099_p8 = por %p3098_p7, %p3097_p6 }
 0x24a   :  { %v2167_v27 = vrot.slane %v2166_v38, 1  ;;  %v2200_v16 = vadd.f32 %v2199_v42, %v2198_v0 }
 0x24b   :  { %p3100_p9 = pnand %p3099_p8, %p3093_p5 }
 0x24c   :  { %v2168_v23 = vadd.f32 %v2167_v27, %v2166_v38  ;;  %v2201_v9 = vrot.slane %v2200_v16, 1 }
 0x24e   :  { %2274 = vst [vmem:[#allocation5] sm:$0x1] %v2168_v23  ;;  %v2202_v39 = vadd.f32 %v2201_v9, %v2200_v16 }
 0x24f   :  { %3103 = shalt.err (!%p3100_p9)
}
 0x250   :  { %2297 = dma.vmem_to_hbm [thread:$0]  %s2295_s19, 16, %s4640_s5, [#allocation6]   ;;  %2275 = vst [vmem:[#allocation7] sm:$0x1] %v2202_v39 }
 0x251   :  { %s3112_s24 = scalar_lea.vmem %s2305_s21, 16  ;;  %s3116_s26 = scalar_lea.vmem %s2305_s21, 32 }
 0x252   :  { %p3113_p10 = scmp.ne.s32.totalorder %s2305_s21, %s3112_s24  ;;  %p3117_p11 = scmp.lt.s32.totalorder %s2305_s21, %s2305_s21 }
 0x253   :  { %p3118_p12 = scmp.lt.s32.totalorder %s3116_s26, %s3112_s24 }
 0x255   :  { %p3119_p13 = por %p3118_p12, %p3117_p11 }
 0x257   :  { %p3120_p0 = pnand %p3119_p13, %p3113_p10 }
 0x259   :  { %3123 = shalt.err (!%p3120_p0)
}
 0x25a   :  { %2307 = dma.vmem_to_hbm [thread:$0]  %s2305_s21, 16, %s4641_s6, [#allocation6]  }
 0x25b   :  { %3132 = dma.done.wait [#allocation4], 896  }
 0x25c   :  { %3133 = vsyncadd [#allocation4], 4294966400 }
 0x25d   :  { %3134 = dma.done.wait [#allocation6], 32  }
 0x25e   :  { %3135 = vsyncadd [#allocation6], 4294967264 }
 0x25f   :  { %2317 = vsyncpa [#allocation4], 1 }
 0x260   :  { %2318 = vsyncpa [#allocation6], 1 }

</bundles_post_ra>
